<compile_context>
chip_gen: v7x
topology: tpu7x:2x2x1
jax: 0.10.0
libtpu: 0.0.40
codegen_flags: <defaults>
</compile_context>

<pallas_src>
import functools

import jax
import jax.numpy as jnp
from jax import lax
from jax.experimental import pallas as pl
from jax.experimental.pallas import tpu as pltpu


def _bot_kernel(x_ref, w1_ref, b1_ref, wqkv_ref, bqkv_ref, o_ref, *,
                heads, hw, nb, mxu_dtype):
    # x_ref:    (C, nb*hw)  VMEM  lane-dense input: lanes = nb images x (H*W)
    # w1_ref:   (C, C)      VMEM  cv1 1x1-conv weight with BN folded in
    # b1_ref:   (C, 1)      VMEM  cv1 folded bias (f32)
    # wqkv_ref: (3C, C)     VMEM  stacked q/k/v 1x1-conv weights
    # bqkv_ref: (3C, 1)     VMEM  stacked q/k/v biases (f32)
    # o_ref:    (C, nb*hw)  VMEM  output  x + MHSA(cv1(x))
    x = x_ref[...]
    C = x.shape[0]
    d = C // heads

    # cv1: 1x1 conv (BN folded) + SiLU — one MXU matmul over channels.
    y = (jnp.dot(w1_ref[...], x.astype(mxu_dtype),
                 preferred_element_type=jnp.float32) + b1_ref[...])
    y = y * jax.nn.sigmoid(y)                                    # SiLU, f32

    # q/k/v projections fused into a single (3C, C) x (C, nb*hw) MXU matmul.
    qkv = (jnp.dot(wqkv_ref[...], y.astype(mxu_dtype),
                   preferred_element_type=jnp.float32) + bqkv_ref[...])

    # Attention per image (lane slice of width hw); heads are batched into a
    # single dot_general so no per-head unroll keeps extra tiles live.
    outs = []
    for b in range(nb):
        sl = slice(b * hw, (b + 1) * hw)
        q = qkv[0 * C:1 * C, sl].reshape(heads, d, hw).astype(mxu_dtype)
        k = qkv[1 * C:2 * C, sl].reshape(heads, d, hw).astype(mxu_dtype)
        v = qkv[2 * C:3 * C, sl].reshape(heads, d, hw).astype(mxu_dtype)

        # energy[h, i, j] = sum_c q[h, c, i] * k[h, c, j]   (no 1/sqrt(d))
        energy = lax.dot_general(
            q, k, dimension_numbers=(((1,), (1,)), ((0,), (0,))),
            preferred_element_type=jnp.float32)                  # (heads, hw, hw)

        # Softmax with deferred normalization: divide the small (d, hw)
        # output instead of the full (hw, hw) attention tile.
        m = jnp.max(energy, axis=-1, keepdims=True)
        p = jnp.exp(energy - m)                                  # (heads, hw, hw)
        l = jnp.sum(p, axis=-1)                                  # (heads, hw)

        # oh[h, c, i] = sum_j v[h, c, j] * p[h, i, j]
        oh = lax.dot_general(
            v, p.astype(mxu_dtype),
            dimension_numbers=(((2,), (2,)), ((0,), (0,))),
            preferred_element_type=jnp.float32)                  # (heads, d, hw)
        oh = oh * (1.0 / l)[:, None, :]                          # exact recip
        outs.append(oh.reshape(C, hw))

    mhsa = outs[0] if nb == 1 else jnp.concatenate(outs, axis=-1)

    # Residual add + one unmasked full-width lane-dense store.
    o_ref[...] = (x.astype(jnp.float32) + mhsa).astype(o_ref.dtype)


def bottleneck_transformer(x, params, *, heads=4, bn_eps=1e-5,
                           mxu_dtype=jnp.float32):
    """x: (N, C, H, W) with c1 == c2 == C. Returns (N, C, H, W).

    mxu_dtype: dtype fed to the MXU matmuls (accumulation stays f32).
    jnp.bfloat16 halves VMEM/DMA traffic on v6e/v7x; keep f32 when tight
    numerical tolerances matter.
    """
    N, C, H, W = x.shape
    HW = H * W
    assert C % heads == 0

    # Fold BatchNorm (eval mode) into the cv1 1x1-conv weight/bias.
    scale = params["bn_gamma"] / jnp.sqrt(params["bn_var"] + bn_eps)     # (C,)
    w1 = (params["w_cv1"] * scale[:, None]).astype(mxu_dtype)            # (C, C)
    b1 = ((params["bn_beta"] - params["bn_mean"] * scale)[:, None]
          .astype(jnp.float32))                                          # (C, 1)

    # Stack q/k/v projection weights/biases so the kernel does one big matmul.
    wqkv = jnp.concatenate(
        [params["w_q"], params["w_k"], params["w_v"]], axis=0
    ).astype(mxu_dtype)                                                  # (3C, C)
    bqkv = jnp.concatenate(
        [params["b_q"], params["b_k"], params["b_v"]], axis=0
    )[:, None].astype(jnp.float32)                                       # (3C, 1)

    # Lane-dense layout: channels on sublanes, (image, pixel) on lanes.
    x_l = x.reshape(N, C, HW).transpose(1, 0, 2).reshape(C, N * HW)

    # Fold enough images onto the lane axis to reach >=128 lanes per block.
    nb = 1
    if HW < 128:
        want = min(N, max(1, -(-128 // HW)))         # ceil(128 / HW), capped
        for cand in range(want, 0, -1):
            if N % cand == 0:
                nb = cand
                break
    if (nb * HW) % 128 != 0:
        nb = N                                        # full-extent block fallback

    lanes = nb * HW
    kernel = functools.partial(_bot_kernel, heads=heads, hw=HW, nb=nb,
                               mxu_dtype=mxu_dtype)
    out = pl.pallas_call(
        kernel,
        out_shape=jax.ShapeDtypeStruct((C, N * HW), x.dtype),
        grid_spec=pltpu.PrefetchScalarGridSpec(
            num_scalar_prefetch=0,
            grid=(N // nb,),
            in_specs=[
                pl.BlockSpec((C, lanes), lambda n: (0, n)),
                pl.BlockSpec((C, C), lambda n: (0, 0)),
                pl.BlockSpec((C, 1), lambda n: (0, 0)),
                pl.BlockSpec((3 * C, C), lambda n: (0, 0)),
                pl.BlockSpec((3 * C, 1), lambda n: (0, 0)),
            ],
            out_specs=pl.BlockSpec((C, lanes), lambda n: (0, n)),
        ),
        compiler_params=pltpu.CompilerParams(
            dimension_semantics=("parallel",)),
    )(x_l, w1, b1, wqkv, bqkv)

    return out.reshape(C, N, HW).transpose(1, 0, 2).reshape(N, C, H, W)


def reference(x, params, *, heads=4, bn_eps=1e-5):
    """Pure-JAX reference of BottleneckTransformer.forward (default config)."""
    N, C, H, W = x.shape
    HP = jax.lax.Precision.HIGHEST

    # cv1: 1x1 conv (no bias) + BatchNorm (eval) + SiLU
    y = jnp.einsum("oc,nchw->nohw", params["w_cv1"], x, precision=HP)
    mean = params["bn_mean"][None, :, None, None]
    var = params["bn_var"][None, :, None, None]
    gamma = params["bn_gamma"][None, :, None, None]
    beta = params["bn_beta"][None, :, None, None]
    y = (y - mean) / jnp.sqrt(var + bn_eps) * gamma + beta
    y = y * jax.nn.sigmoid(y)

    # MHSA (pos_emb=False)
    def proj(wn, bn):
        return (jnp.einsum("oc,nchw->nohw", params[wn], y, precision=HP)
                + params[bn][None, :, None, None])

    q, k, v = proj("w_q", "b_q"), proj("w_k", "b_k"), proj("w_v", "b_v")
    d = C // heads
    q = q.reshape(N, heads, d, H * W)
    k = k.reshape(N, heads, d, H * W)
    v = v.reshape(N, heads, d, H * W)
    energy = jnp.einsum("nhdq,nhdk->nhqk", q, k, precision=HP)
    attn = jax.nn.softmax(energy, axis=-1)
    out = jnp.einsum("nhdk,nhqk->nhdq", v, attn, precision=HP)
    return x + out.reshape(N, C, H, W)


if __name__ == "__main__":
    key = jax.random.PRNGKey(0)
    ks = jax.random.split(key, 12)

    # Small config consistent with the module: c1 == c2 == 32, resolution=(8,8),
    # heads=4, stride=1, expansion=1  ->  shortcut (residual) path is active.
    N, C, H, W, HEADS = 2, 32, 8, 8, 4
    x = jax.random.normal(ks[0], (N, C, H, W), dtype=jnp.float32)

    sc = 1.0 / (C ** 0.5)
    params = {
        "w_cv1":    jax.random.normal(ks[1], (C, C), jnp.float32) * sc,
        "bn_gamma": jax.random.uniform(ks[2], (C,), jnp.float32, 0.5, 1.5),
        "bn_beta":  jax.random.normal(ks[3], (C,), jnp.float32) * 0.1,
        "bn_mean":  jax.random.normal(ks[4], (C,), jnp.float32) * 0.1,
        "bn_var":   jax.random.uniform(ks[5], (C,), jnp.float32, 0.5, 1.5),
        "w_q": jax.random.normal(ks[6], (C, C), jnp.float32) * sc,
        "b_q": jax.random.normal(ks[7], (C,), jnp.float32) * 0.1,
        "w_k": jax.random.normal(ks[8], (C, C), jnp.float32) * sc,
        "b_k": jax.random.normal(ks[9], (C,), jnp.float32) * 0.1,
        "w_v": jax.random.normal(ks[10], (C, C), jnp.float32) * sc,
        "b_v": jax.random.normal(ks[11], (C,), jnp.float32) * 0.1,
    }

    out = bottleneck_transformer(x, params, heads=HEADS)
    out = jax.block_until_ready(out)

    ref = reference(x, params, heads=HEADS)
    assert out.shape == (N, C, H, W), out.shape
    max_err = float(jnp.max(jnp.abs(out - ref)))
    assert jnp.allclose(out, ref, atol=2e-4, rtol=2e-4), max_err

    print("KERNEL_OK")
</pallas_src>

<mosaic_0001>
module attributes {stable_mosaic.version = 11 : i64} {
  func.func @_bot_kernel(%arg0: i32, %arg1: memref<32x128xf32, #tpu.memory_space<vmem>>, %arg2: memref<32x32xf32, #tpu.memory_space<vmem>>, %arg3: memref<32x1xf32, #tpu.memory_space<vmem>>, %arg4: memref<96x32xf32, #tpu.memory_space<vmem>>, %arg5: memref<96x1xf32, #tpu.memory_space<vmem>>, %arg6: memref<32x128xf32, #tpu.memory_space<vmem>>) attributes {dimension_semantics = [#tpu.dimension_semantics<parallel>], iteration_bounds = array<i64: 1>, scalar_prefetch = 0 : i64, scratch_operands = 0 : i64, tpu.core_type = #tpu.core_type<tc>, window_params = [{transform_indices = @transform_0, window_bounds = array<i64: 32, 128>}, {pipeline_mode = #tpu.pipeline_mode<synchronous>, transform_indices = @transform_1, window_bounds = array<i64: 32, 32>}, {pipeline_mode = #tpu.pipeline_mode<synchronous>, transform_indices = @transform_2, window_bounds = array<i64: 32, 1>}, {pipeline_mode = #tpu.pipeline_mode<synchronous>, transform_indices = @transform_3, window_bounds = array<i64: 96, 32>}, {pipeline_mode = #tpu.pipeline_mode<synchronous>, transform_indices = @transform_4, window_bounds = array<i64: 96, 1>}, {transform_indices = @transform_5, window_bounds = array<i64: 32, 128>}]} {
    %c0 = arith.constant 0 : index
    %c0_0 = arith.constant 0 : index
    %0 = vector.load %arg1[%c0, %c0_0] : memref<32x128xf32, #tpu.memory_space<vmem>>, vector<32x128xf32>
    %c0_1 = arith.constant 0 : index
    %c0_2 = arith.constant 0 : index
    %1 = vector.load %arg2[%c0_1, %c0_2] : memref<32x32xf32, #tpu.memory_space<vmem>>, vector<32x32xf32>
    %cst = arith.constant dense<0.000000e+00> : vector<32x128xf32>
    %2 = tpu.matmul %1, %0, %cst {dimension_numbers = #tpu.dot_dimension_numbers<[1], [0], [0], [1], [0, 0, 1, 1], [], []>} : vector<32x32xf32>, vector<32x128xf32>, vector<32x128xf32> -> vector<32x128xf32>
    %c0_3 = arith.constant 0 : index
    %c0_4 = arith.constant 0 : index
    %3 = vector.load %arg3[%c0_3, %c0_4] : memref<32x1xf32, #tpu.memory_space<vmem>>, vector<32x1xf32>
    %4 = vector.broadcast %3 : vector<32x1xf32> to vector<32x128xf32>
    %5 = arith.addf %2, %4 : vector<32x128xf32>
    %6 = arith.negf %5 : vector<32x128xf32>
    %7 = math.exp %6 : vector<32x128xf32>
    %cst_5 = arith.constant 1.000000e+00 : f32
    %8 = vector.broadcast %cst_5 : f32 to vector<32x128xf32>
    %9 = arith.addf %8, %7 : vector<32x128xf32>
    %10 = arith.divf %8, %9 : vector<32x128xf32>
    %11 = arith.mulf %5, %10 : vector<32x128xf32>
    %c0_6 = arith.constant 0 : index
    %c0_7 = arith.constant 0 : index
    %12 = vector.load %arg4[%c0_6, %c0_7] : memref<96x32xf32, #tpu.memory_space<vmem>>, vector<96x32xf32>
    %cst_8 = arith.constant dense<0.000000e+00> : vector<96x128xf32>
    %13 = tpu.matmul %12, %11, %cst_8 {dimension_numbers = #tpu.dot_dimension_numbers<[1], [0], [0], [1], [0, 0, 1, 1], [], []>} : vector<96x32xf32>, vector<32x128xf32>, vector<96x128xf32> -> vector<96x128xf32>
    %c0_9 = arith.constant 0 : index
    %c0_10 = arith.constant 0 : index
    %14 = vector.load %arg5[%c0_9, %c0_10] : memref<96x1xf32, #tpu.memory_space<vmem>>, vector<96x1xf32>
    %15 = vector.broadcast %14 : vector<96x1xf32> to vector<96x128xf32>
    %16 = arith.addf %13, %15 : vector<96x128xf32>
    %17 = vector.extract_strided_slice %16 {offsets = [0, 0], sizes = [32, 64], strides = [1, 1]} : vector<96x128xf32> to vector<32x64xf32>
    %18 = vector.shape_cast %17 : vector<32x64xf32> to vector<4x8x64xf32>
    %19 = vector.extract_strided_slice %16 {offsets = [32, 0], sizes = [32, 64], strides = [1, 1]} : vector<96x128xf32> to vector<32x64xf32>
    %20 = vector.shape_cast %19 : vector<32x64xf32> to vector<4x8x64xf32>
    %21 = vector.extract_strided_slice %16 {offsets = [64, 0], sizes = [32, 64], strides = [1, 1]} : vector<96x128xf32> to vector<32x64xf32>
    %22 = vector.shape_cast %21 : vector<32x64xf32> to vector<4x8x64xf32>
    %cst_11 = arith.constant dense<0.000000e+00> : vector<4x64x64xf32>
    %23 = tpu.matmul %18, %20, %cst_11 {dimension_numbers = #tpu.dot_dimension_numbers<[1], [1], [2], [2], [0, 0, 0, 2, 1, 2], [0], [0]>} : vector<4x8x64xf32>, vector<4x8x64xf32>, vector<4x64x64xf32> -> vector<4x64x64xf32>
    %cst_12 = arith.constant dense<0xFF800000> : vector<4x64xf32>
    %24 = vector.multi_reduction <maximumf>, %23, %cst_12 [2] : vector<4x64x64xf32> to vector<4x64xf32>
    %25 = vector.shape_cast %24 : vector<4x64xf32> to vector<4x64x1xf32>
    %26 = vector.broadcast %25 : vector<4x64x1xf32> to vector<4x64x64xf32>
    %27 = arith.subf %23, %26 : vector<4x64x64xf32>
    %28 = math.exp %27 : vector<4x64x64xf32>
    %cst_13 = arith.constant dense<0.000000e+00> : vector<4x64xf32>
    %29 = vector.multi_reduction <add>, %28, %cst_13 [2] : vector<4x64x64xf32> to vector<4x64xf32>
    %cst_14 = arith.constant dense<0.000000e+00> : vector<4x8x64xf32>
    %30 = tpu.matmul %22, %28, %cst_14 {dimension_numbers = #tpu.dot_dimension_numbers<[2], [2], [1], [1], [0, 0, 0, 1, 1, 1], [0], [0]>} : vector<4x8x64xf32>, vector<4x64x64xf32>, vector<4x8x64xf32> -> vector<4x8x64xf32>
    %cst_15 = arith.constant 1.000000e+00 : f32
    %31 = vector.broadcast %cst_15 : f32 to vector<4x64xf32>
    %32 = arith.divf %31, %29 : vector<4x64xf32>
    %33 = vector.shape_cast %32 : vector<4x64xf32> to vector<4x1x64xf32>
    %34 = vector.broadcast %33 : vector<4x1x64xf32> to vector<4x8x64xf32>
    %35 = arith.mulf %30, %34 : vector<4x8x64xf32>
    %36 = vector.shape_cast %35 : vector<4x8x64xf32> to vector<32x64xf32>
    %37 = vector.extract_strided_slice %16 {offsets = [0, 64], sizes = [32, 64], strides = [1, 1]} : vector<96x128xf32> to vector<32x64xf32>
    %38 = vector.shape_cast %37 : vector<32x64xf32> to vector<4x8x64xf32>
    %39 = vector.extract_strided_slice %16 {offsets = [32, 64], sizes = [32, 64], strides = [1, 1]} : vector<96x128xf32> to vector<32x64xf32>
    %40 = vector.shape_cast %39 : vector<32x64xf32> to vector<4x8x64xf32>
    %41 = vector.extract_strided_slice %16 {offsets = [64, 64], sizes = [32, 64], strides = [1, 1]} : vector<96x128xf32> to vector<32x64xf32>
    %42 = vector.shape_cast %41 : vector<32x64xf32> to vector<4x8x64xf32>
    %cst_16 = arith.constant dense<0.000000e+00> : vector<4x64x64xf32>
    %43 = tpu.matmul %38, %40, %cst_16 {dimension_numbers = #tpu.dot_dimension_numbers<[1], [1], [2], [2], [0, 0, 0, 2, 1, 2], [0], [0]>} : vector<4x8x64xf32>, vector<4x8x64xf32>, vector<4x64x64xf32> -> vector<4x64x64xf32>
    %cst_17 = arith.constant dense<0xFF800000> : vector<4x64xf32>
    %44 = vector.multi_reduction <maximumf>, %43, %cst_17 [2] : vector<4x64x64xf32> to vector<4x64xf32>
    %45 = vector.shape_cast %44 : vector<4x64xf32> to vector<4x64x1xf32>
    %46 = vector.broadcast %45 : vector<4x64x1xf32> to vector<4x64x64xf32>
    %47 = arith.subf %43, %46 : vector<4x64x64xf32>
    %48 = math.exp %47 : vector<4x64x64xf32>
    %cst_18 = arith.constant dense<0.000000e+00> : vector<4x64xf32>
    %49 = vector.multi_reduction <add>, %48, %cst_18 [2] : vector<4x64x64xf32> to vector<4x64xf32>
    %cst_19 = arith.constant dense<0.000000e+00> : vector<4x8x64xf32>
    %50 = tpu.matmul %42, %48, %cst_19 {dimension_numbers = #tpu.dot_dimension_numbers<[2], [2], [1], [1], [0, 0, 0, 1, 1, 1], [0], [0]>} : vector<4x8x64xf32>, vector<4x64x64xf32>, vector<4x8x64xf32> -> vector<4x8x64xf32>
    %cst_20 = arith.constant 1.000000e+00 : f32
    %51 = vector.broadcast %cst_20 : f32 to vector<4x64xf32>
    %52 = arith.divf %51, %49 : vector<4x64xf32>
    %53 = vector.shape_cast %52 : vector<4x64xf32> to vector<4x1x64xf32>
    %54 = vector.broadcast %53 : vector<4x1x64xf32> to vector<4x8x64xf32>
    %55 = arith.mulf %50, %54 : vector<4x8x64xf32>
    %56 = vector.shape_cast %55 : vector<4x8x64xf32> to vector<32x64xf32>
    %57 = tpu.concatenate %36, %56 in 1 : vector<32x64xf32>, vector<32x64xf32> -> vector<32x128xf32>
    %58 = arith.addf %0, %57 : vector<32x128xf32>
    %c0_21 = arith.constant 0 : index
    %c0_22 = arith.constant 0 : index
    %59 = vector.load %arg6[%c0_21, %c0_22] : memref<32x128xf32, #tpu.memory_space<vmem>>, vector<32x128xf32>
    tpu.vector_store %arg6[%c0_21, %c0_22], %58 {strides = array<i32>} : memref<32x128xf32, #tpu.memory_space<vmem>>, vector<32x128xf32>,
    return
  }
  func.func @transform_0(%arg0: i32) -> (i32, i32) {
    %c0_i32 = arith.constant 0 : i32
    %c0_i32_0 = arith.constant 0 : i32
    return %c0_i32, %arg0 : i32, i32
  }
  func.func @transform_1(%arg0: i32) -> (i32, i32) {
    %c0_i32 = arith.constant 0 : i32
    %c0_i32_0 = arith.constant 0 : i32
    %c0_i32_1 = arith.constant 0 : i32
    return %c0_i32, %c0_i32_0 : i32, i32
  }
  func.func @transform_2(%arg0: i32) -> (i32, i32) {
    %c0_i32 = arith.constant 0 : i32
    %c0_i32_0 = arith.constant 0 : i32
    %c0_i32_1 = arith.constant 0 : i32
    return %c0_i32, %c0_i32_0 : i32, i32
  }
  func.func @transform_3(%arg0: i32) -> (i32, i32) {
    %c0_i32 = arith.constant 0 : i32
    %c0_i32_0 = arith.constant 0 : i32
    %c0_i32_1 = arith.constant 0 : i32
    return %c0_i32, %c0_i32_0 : i32, i32
  }
  func.func @transform_4(%arg0: i32) -> (i32, i32) {
    %c0_i32 = arith.constant 0 : i32
    %c0_i32_0 = arith.constant 0 : i32
    %c0_i32_1 = arith.constant 0 : i32
    return %c0_i32, %c0_i32_0 : i32, i32
  }
  func.func @transform_5(%arg0: i32) -> (i32, i32) {
    %c0_i32 = arith.constant 0 : i32
    %c0_i32_0 = arith.constant 0 : i32
    return %c0_i32, %arg0 : i32, i32
  }
}

</mosaic_0001>

<bundles_post_ra>
// kernel: tpu_custom_call.1
= control target key start
LH: loop header
LB: loop body
LE: loop exit
PB: predicated region body
PF: predicated region fallthrough
CT: control target
= control target key end

     0   :  { %vm53_vm0 = vcmask 261120   ;;  %v4818_v6 = vmov 0   ;;  %s6147_s0 = inlined_call_operand.vmem [shape: f32[32,128], index: 0, kind: input, shape index: {}]   ;;  %s6148_s1 = inlined_call_operand.vmem [shape: f32[32,32], index: 1, kind: input, shape index: {}]   ;;  %s6149_s2 = inlined_call_operand.vmem [shape: f32[32,1], index: 2, kind: input, shape index: {}]   ;;  %s6150_s3 = inlined_call_operand.vmem [shape: f32[96,32], index: 3, kind: input, shape index: {}]   ;;  %s6151_s4 = inlined_call_operand.vmem [shape: f32[96,1], index: 4, kind: input, shape index: {}]   ;;  %s6152_s5 = inlined_call_operand.hbm [shape: f32[32,128], index: 5, kind: output, shape index: {}]  }
   0x1   :  { %v21_v0 = vld [vmem:[%s6147_s0] sm:$0xff]  ;;  %v22_v1 = vld [vmem:[%s6147_s0 + $0x8] sm:$0xff]  ;;  %v23_v2 = vld [vmem:[%s6147_s0 + $0x10] sm:$0xff]  ;;  %4517 = vset.pattern.permute.xlu1 %v4818_v6  ;;  %4516 = vset.pattern.permute.xlu0 %v4818_v6 }
   0x2   :  { %v4364_v3 = vpack.c.bf16 %v22_v1, %v21_v0  ;;  %v24_v4 = vld [vmem:[%s6147_s0 + $0x18] sm:$0xff]  ;;  %v25_v5 = vld [vmem:[%s6148_s1] sm:$0xff]  ;;  %v31_v8 = vld [vmem:[%s6149_s2 + $0x10] sm:$0xff] }
   0x3   :  { %v4368_v7 = vpack.c.bf16 %v24_v4, %v23_v2  ;;  %4068 = vmatprep.mubr.msk.f32.mxu1 %vm53_vm0, %v25_v5  ;;  %45 = vperm.xlu1 %4517, %v31_v8   ;;  %v29_v9 = vld [vmem:[%s6149_s2] sm:$0xff]  ;;  %v32_v10 = vld [vmem:[%s6149_s2 + $0x18] sm:$0xff]  ;;  %v30_v11 = vld [vmem:[%s6149_s2 + $0x8] sm:$0xff] }
   0x4   :  { %4365 = vmatprep.subr.bf16.mxu1 %v4364_v3  ;;  %35 = vperm.xlu0 %4516, %v29_v9  }
   0x5   :  { %4367 = vmatpush3.bf16.msra.mxu1 %v4364_v3 }
   0x6   :  { %4369 = vmatprep.subr.bf16.mxu1 %v4368_v7 }
   0x7   :  { %10 = vsyncpa [#allocation3], 0  ;;  %50 = vperm.xlu1 %4517, %v32_v10   ;;  %v26_v12 = vld [vmem:[%s6148_s1 + $0x8] sm:$0xff]  ;;  %v27_v14 = vld [vmem:[%s6148_s1 + $0x10] sm:$0xff]  ;;  %s4819_s29 = smov 64   ;;  %vm456_vm1 = vcmask 64512  }
   0x8   :  { %v192_v13 = vld [vmem:[%s6151_s4 + $0x8] sm:$0xff]  ;;  %40 = vperm.xlu0 %4516, %v30_v11   ;;  %v191_v15 = vld [vmem:[%s6151_s4] sm:$0xff]  ;;  %v28_v16 = vld [vmem:[%s6148_s1 + $0x18] sm:$0xff]  ;;  %vm1069_vm2 = vcmask 523264   ;;  %vm4821_vm3 = vmmov 0   ;;  %vm1853_vm5 = vcmask 130112  }
   0x9   :  { %4371 = vmatpush3.bf16.msra.mxu1 %v4368_v7  ;;  %v193_v17 = vld [vmem:[%s6151_s4 + $0x10] sm:$0xff]  ;;  %v195_v18 = vld [vmem:[%s6151_s4 + $0x20] sm:$0xff]  ;;  %v196_v19 = vld [vmem:[%s6151_s4 + $0x28] sm:$0xff]  ;;  %vm1860_vm6 = vcmask 195712   ;;  %vm1867_vm7 = vcmask 261312   ;;  %vm1874_vm8 = vcmask 326912  }
   0xa   :  { %v194_v20 = vld [vmem:[%s6151_s4 + $0x18] sm:$0xff]  ;;  %v197_v21 = vld [vmem:[%s6151_s4 + $0x30] sm:$0xff]  ;;  %v179_v23 = vld [vmem:[%s6150_s3] sm:$0xff]  ;;  %vm1881_vm9 = vcmask 392512   ;;  %vm1888_vm10 = vcmask 458112   ;;  %vm1895_vm11 = vcmask 523712  }
   0xb   :  { %210 = vperm.xlu1 %4517, %v192_v13   ;;  %v198_v22 = vld [vmem:[%s6151_s4 + $0x38] sm:$0xff]  ;;  %v180_v58 = vld [vmem:[%s6150_s3 + $0x8] sm:$0xff]  ;;  %v181_v59 = vld [vmem:[%s6150_s3 + $0x10] sm:$0xff]  ;;  %s4823_s16 = smov [#allocation2]  }
   0xc   :  { %4069 = vmatmul.mubr.msk.f32.vlgmr.msra.gmra.mrb[0].mxu1 %vm53_vm0, %v26_v12  ;;  %205 = vperm.xlu0 %4516, %v191_v15   ;;  %v182_v60 = vld [vmem:[%s6150_s3 + $0x18] sm:$0xff]  ;;  %v183_v61 = vld [vmem:[%s6150_s3 + $0x20] sm:$0xff]  ;;  %v184_v62 = vld [vmem:[%s6150_s3 + $0x28] sm:$0xff]  ;;  %s3725_s17 = sshll.u32 %s4823_s16, 4  ;;  %s3726_s17 = int_to_ptr.vmem [resolvable:$true] %s3725_s17 }
   0xd   :  { %4071 = vmatprep.mubr.msk.f32.mxu1 %vm53_vm0, %v27_v14  ;;  %v185_v63 = vld [vmem:[%s6150_s3 + $0x30] sm:$0xff]  ;;  %v186_v0 = vld [vmem:[%s6150_s3 + $0x38] sm:$0xff]  ;;  %v187_v1 = vld [vmem:[%s6150_s3 + $0x40] sm:$0xff]  ;;  %s4794_s19 = scalar_lea.vmem %s3726_s17, 512  ;;  %p4799_p1 = scmp.lt.s32.totalorder %s3726_s17, %s3726_s17 }
   0xe   :  { %v188_v2 = vld [vmem:[%s6150_s3 + $0x48] sm:$0xff]  ;;  %v189_v3 = vld [vmem:[%s6150_s3 + $0x50] sm:$0xff]  ;;  %v190_v4 = vld [vmem:[%s6150_s3 + $0x58] sm:$0xff]  ;;  %p4795_p0 = scmp.ne.s32.totalorder %s3726_s17, %s4794_s19  ;;  %p4800_p2 = scmp.lt.s32.totalorder %s4794_s19, %s4794_s19 }
   0xf   :  { %215 = vperm.xlu1 %4517, %v193_v17   ;;  %vm5192_vm4 = vmpackc.low %vm1069_vm2, %vm1069_vm2 }
  0x10   :  { %4072 = vmatmul.mubr.msk.f32.gmra.mrb[2].mxu1 %vm53_vm0, %v28_v16  ;;  %225 = vperm.xlu0 %4516, %v195_v18   ;;  %p4801_p3 = por %p4800_p2, %p4799_p1 }
  0x11   :  { %4082 = vmatprep.mubr.msk.f32.mxu1 %vm53_vm0, %v179_v23 }
  0x12   :  { %p4802_p4 = pnand %p4801_p3, %p4795_p0 }
  0x13   :  { %230 = vperm.xlu1 %4517, %v196_v19  }
  0x14   :  { %220 = vperm.xlu0 %4516, %v194_v20  }
  0x17   :  { %235 = vperm.xlu1 %4517, %v197_v21  }
  0x1b   :  { %240 = vperm.xlu1 %4517, %v198_v22  }
  0x82   :  { %v46_v25 = vpop.permute.xlu1 %45 }
  0x83   :  { %v36_v24 = vpop.permute.xlu0 %35 }
  0x86   :  { %v51_v32 = vpop.permute.xlu1 %50 }
  0x87   :  { %v41_v26 = vpop.permute.xlu0 %40 }
  0x8a   :  { %v211_v5 = vpop.permute.xlu1 %210 }
  0x8b   :  { %v206_v6 = vpop.permute.xlu0 %205 }
  0x8e   :  { %v216_v8 = vpop.permute.xlu1 %215 }
  0x8f   :  { %v226_v16 = vpop.permute.xlu0 %225 }
  0x92   :  { %v231_v14 = vpop.permute.xlu1 %230 }
  0x96   :  { %v236_v21 = vpop.permute.xlu1 %235 }
  0xdf   :  { %v4070_v27 = vpop.f32.mrb[0].mxu1 }
  0xe0   :  { %v138_v28 = vadd.f32 %v4070_v27, %v41_v26  ;;  %v132_v29 = vpop.f32.mrb[1].mxu1  ;;  %v199_v27 = vld [vmem:[%s6151_s4 + $0x40] sm:$0xff] }
  0xe1   :  { %v133_v30 = vadd.f32 %v132_v29, %v36_v24  ;;  %v221_v24 = vpop.permute.xlu0 %220 }
  0xe2   :  { %v3741_v31 = vmul.f32 -1.442695, %v138_v28 }
  0xe3   :  { %v3740_v33 = vmul.f32 -1.442695, %v133_v30  ;;  %v4073_v34 = vpop.f32.mrb[2].mxu1 }
  0xe4   :  { %4518 = vpow2.f32 %v3741_v31  ;;  %v148_v35 = vadd.f32 %v4073_v34, %v51_v32  ;;  %v142_v36 = vpop.f32.mrb[3].mxu1  ;;  %v200_v34 = vld [vmem:[%s6151_s4 + $0x48] sm:$0xff] }
  0xe5   :  { %4520 = vpow2.f32 %v3740_v33  ;;  %v143_v37 = vadd.f32 %v142_v36, %v46_v25  ;;  %v202_v33 = vld [vmem:[%s6151_s4 + $0x58] sm:$0xff] }
  0xe6   :  { %v3743_v38 = vmul.f32 -1.442695, %v148_v35 }
  0xe7   :  { %v3742_v39 = vmul.f32 -1.442695, %v143_v37 }
  0xe8   :  { %4522 = vpow2.f32 %v3743_v38 }
  0xe9   :  { %4524 = vpow2.f32 %v3742_v39 }
  0xee   :  { %v4519_v40 = vpop.eup %4518 }
  0xef   :  { %v4521_v41 = vpop.eup %4520  ;;  %v164_v42 = vadd.f32 1.0, %v4519_v40 }
  0xf0   :  { %v163_v43 = vadd.f32 1.0, %v4521_v41 }
  0xf1   :  { %4526 = vrcp.f32 %v164_v42 }
  0xf2   :  { %v4523_v44 = vpop.eup %4522  ;;  %4528 = vrcp.f32 %v163_v43 }
  0xf3   :  { %v4525_v45 = vpop.eup %4524  ;;  %v166_v46 = vadd.f32 1.0, %v4523_v44 }
  0xf4   :  { %v165_v47 = vadd.f32 1.0, %v4525_v45 }
  0xf5   :  { %4530 = vrcp.f32 %v166_v46 }
  0xf6   :  { %4532 = vrcp.f32 %v165_v47 }
  0xfb   :  { %v4527_v48 = vpop.eup %4526 }
  0xfc   :  { %v4529_v49 = vpop.eup %4528  ;;  %v176_v50 = vmul.f32 %v4527_v48, %v138_v28 }
  0xfd   :  { %v175_v51 = vmul.f32 %v4529_v49, %v133_v30  ;;  %v201_v30 = vld [vmem:[%s6151_s4 + $0x50] sm:$0xff] }
  0xff   :  { %v4531_v52 = vpop.eup %4530  ;;  %v4372_v53 = vpack.c.bf16 %v176_v50, %v175_v51 }
 0x100   :  { %v4533_v54 = vpop.eup %4532  ;;  %v178_v55 = vmul.f32 %v4531_v52, %v148_v35  ;;  %v241_v35 = vpop.permute.xlu1 %240 }
 0x101   :  { %v177_v56 = vmul.f32 %v4533_v54, %v143_v37  ;;  %4373 = vmatprep.subr.bf16.mxu1 %v4372_v53 }
 0x102   :  { %4375 = vmatpush3.bf16.msra.mxu1 %v4372_v53 }
 0x103   :  { %v4376_v57 = vpack.c.bf16 %v178_v55, %v177_v56 }
 0x105   :  { %4377 = vmatprep.subr.bf16.mxu1 %v4376_v57 }
 0x106   :  { %4379 = vmatpush3.bf16.msra.mxu1 %v4376_v57 }
 0x109   :  { %4083 = vmatmul.mubr.msk.f32.vlgmr.msra.gmra.mrb[4].mxu1 %vm53_vm0, %v180_v58 }
 0x10a   :  { %4085 = vmatprep.mubr.msk.f32.mxu1 %vm53_vm0, %v181_v59 }
 0x10d   :  { %4086 = vmatmul.mubr.msk.f32.gmra.mrb[6].mxu1 %vm53_vm0, %v182_v60 }
 0x10e   :  { %4088 = vmatprep.mubr.msk.f32.mxu1 %vm53_vm0, %v183_v61 }
 0x111   :  { %4089 = vmatmul.mubr.msk.f32.gmra.mrb[8].mxu1 %vm53_vm0, %v184_v62 }
 0x112   :  { %4091 = vmatprep.mubr.msk.f32.mxu1 %vm53_vm0, %v185_v63 }
 0x115   :  { %4092 = vmatmul.mubr.msk.f32.gmra.mrb[10].mxu1 %vm53_vm0, %v186_v0 }
 0x116   :  { %4094 = vmatprep.mubr.msk.f32.mxu1 %vm53_vm0, %v187_v1 }
 0x119   :  { %4095 = vmatmul.mubr.msk.f32.gmra.mrb[12].mxu1 %vm53_vm0, %v188_v2 }
 0x11a   :  { %4097 = vmatprep.mubr.msk.f32.mxu1 %vm53_vm0, %v189_v3 }
 0x11d   :  { %4098 = vmatmul.mubr.msk.f32.gmra.mrb[14].mxu1 %vm53_vm0, %v190_v4 }
 0x1dc   :  { %v4084_v7 = vpop.f32.mrb[4].mxu1 }
 0x1dd   :  { %v371_v9 = vadd.f32 %v4084_v7, %v211_v5  ;;  %v365_v10 = vpop.f32.mrb[5].mxu1 }
 0x1de   :  { %v366_v11 = vadd.f32 %v365_v10, %v206_v6 }
 0x1df   :  { %586 = vxpose.xlu1.b32.start.end [1/1] (short) (narrow) %v371_v9, 64 }
 0x1e0   :  { %v4087_v12 = vpop.f32.mrb[6].mxu1  ;;  %424 = vxpose.xlu0.b32.start.end [1/1] (short) (narrow) %v366_v11, 64 }
 0x1e1   :  { %v375_v13 = vpop.f32.mrb[7].mxu1  ;;  %v381_v25 = vadd.f32 %v4087_v12, %v221_v24 }
 0x1e2   :  { %v376_v26 = vadd.f32 %v375_v13, %v216_v8  ;;  %v6155_v13 = vmov 0.0|0.0  }
 0x1e4   :  { %v4090_v15 = vpop.f32.mrb[8].mxu1 }
 0x1e5   :  { %v385_v17 = vpop.f32.mrb[9].mxu1  ;;  %v391_v19 = vadd.f32 %v4090_v15, %v231_v14 }
 0x1e6   :  { %v386_v18 = vadd.f32 %v385_v17, %v226_v16 }
 0x1e8   :  { %v4093_v20 = vpop.f32.mrb[10].mxu1  ;;  %4100 = vmatprep.subr.mxu0 %v386_v18 }
 0x1e9   :  { %v395_v22 = vpop.f32.mrb[11].mxu1  ;;  %4101 = vmatpush3.msra.mxu0 %v386_v18  ;;  %v4999_v40 = vadd.f32 %v4093_v20, %v241_v35 }
 0x1ea   :  { %v4968_v23 = vadd.f32 %v395_v22, %v236_v21  ;;  %4114 = vmatprep.subr.mxu0 %v391_v19 }
 0x1ec   :  { %4128 = vmatprep.subr.mxu1 %v4968_v23  ;;  %v4975_v28 = vpop.f32.mrb[12].mxu1 }
 0x1ed   :  { %4129 = vmatpush3.msra.mxu1 %v4968_v23  ;;  %v4977_v29 = vpop.f32.mrb[13].mxu1 }
 0x1ee   :  { %4380 = vmatprep.subr.bf16.mxu1 %v6155_v13 }
 0x1f0   :  { %v4983_v31 = vpop.f32.mrb[14].mxu1 }
 0x1f1   :  { %v4985_v32 = vpop.f32.mrb[15].mxu1 }
 0x1fc   :  { %908 = vxpose.xlu1.b32.start.end [1/1] (short) (narrow) %v381_v25, 64 }
 0x1fd   :  { %747 = vxpose.xlu0.b32.start.end [1/1] (short) (narrow) %v376_v26, 64 }
 0x236   :  { %245 = vperm.xlu1 %4517, %v199_v27  }
 0x23a   :  { %2053 = vrot.lane.b32.xlu1 %v366_v11, %s4819_s29 }
 0x23e   :  { %255 = vperm.xlu1 %4517, %v201_v30  }
 0x242   :  { %260 = vperm.xlu1 %4517, %v202_v33   ;;  %250 = vperm.xlu0 %4516, %v200_v34  }
 0x246   :  { %2560 = vrot.lane.b32.xlu1 %v381_v25, %s4819_s29  ;;  %2222 = vrot.lane.b32.xlu0 %v371_v9, %s4819_s29 }
 0x24a   :  { %2258 = vrot.lane.b32.xlu1 %v391_v19, %s4819_s29  ;;  %2391 = vrot.lane.b32.xlu0 %v376_v26, %s4819_s29 }
 0x24e   :  { %2089 = vrot.lane.b32.xlu0 %v386_v18, %s4819_s29 }
 0x25f   :  { %v602_v36 = vpop.trf.xlu1 }
 0x260   :  { %v440_v37 = vpop.trf.xlu0 }
 0x261   :  { %4102 = vmatprep.mubr.msk.f32.mxu0 %vm456_vm1, %v440_v37 }
 0x263   :  { %v603_v38 = vpop.trf.xlu1 }
 0x264   :  { %v441_v39 = vpop.trf.xlu0 }
 0x265   :  { %4103 = vmatmul.mubr.msk.f32.vlgmr.msra.gmra.mrb[0].mxu0 %vm456_vm1, %v441_v39 }
 0x266   :  { %4115 = vmatpush3.msra.mxu0 %v391_v19 }
 0x267   :  { %4142 = vmatprep.subr.mxu0 %v4999_v40  ;;  %v604_v41 = vpop.trf.xlu1 }
 0x268   :  { %v442_v42 = vpop.trf.xlu0 }
 0x269   :  { %4105 = vmatprep.mubr.msk.f32.mxu0 %vm456_vm1, %v442_v42 }
 0x26b   :  { %v605_v43 = vpop.trf.xlu1 }
 0x26c   :  { %v443_v44 = vpop.trf.xlu0 }
 0x26d   :  { %4106 = vmatmul.mubr.msk.f32.gmra.mrb[2].mxu0 %vm456_vm1, %v443_v44 }
 0x26f   :  { %v606_v45 = vpop.trf.xlu1 }
 0x270   :  { %v444_v46 = vpop.trf.xlu0 }
 0x271   :  { %4108 = vmatprep.mubr.msk.f32.mxu0 %vm456_vm1, %v444_v46 }
 0x273   :  { %v607_v47 = vpop.trf.xlu1 }
 0x274   :  { %v445_v48 = vpop.trf.xlu0 }
 0x275   :  { %4109 = vmatmul.mubr.msk.f32.gmra.mrb[4].mxu0 %vm456_vm1, %v445_v48 }
 0x277   :  { %v608_v49 = vpop.trf.xlu1 }
 0x278   :  { %v446_v50 = vpop.trf.xlu0 }
 0x279   :  { %4111 = vmatprep.mubr.msk.f32.mxu0 %vm456_vm1, %v446_v50 }
 0x27b   :  { %v609_v51 = vpop.trf.xlu1 }
 0x27c   :  { %v447_v52 = vpop.trf.xlu0 }
 0x27d   :  { %4112 = vmatmul.mubr.msk.f32.gmra.mrb[6].mxu0 %vm456_vm1, %v447_v52 }
 0x27e   :  { %4116 = vmatprep.mubr.msk.f32.mxu0 %vm456_vm1, %v602_v36 }
 0x27f   :  { %v924_v53 = vpop.trf.xlu1 }
 0x280   :  { %v763_v54 = vpop.trf.xlu0 }
 0x281   :  { %4117 = vmatmul.mubr.msk.f32.vlgmr.msra.gmra.mrb[8].mxu0 %vm456_vm1, %v603_v38  ;;  %4130 = vmatprep.mubr.msk.f32.mxu1 %vm456_vm1, %v763_v54 }
 0x282   :  { %4143 = vmatpush3.msra.mxu0 %v4999_v40  ;;  %4119 = vmatprep.mubr.msk.f32.mxu0 %vm456_vm1, %v604_v41 }
 0x283   :  { %v925_v55 = vpop.trf.xlu1  ;;  %4396 = vmatprep.subr.bf16.mxu0 %v6155_v13 }
 0x284   :  { %v764_v56 = vpop.trf.xlu0 }
 0x285   :  { %4131 = vmatmul.mubr.msk.f32.vlgmr.msra.gmra.mrb[16].mxu1 %vm456_vm1, %v764_v56  ;;  %4120 = vmatmul.mubr.msk.f32.gmra.mrb[10].mxu0 %vm456_vm1, %v605_v43 }
 0x286   :  { %4122 = vmatprep.mubr.msk.f32.mxu0 %vm456_vm1, %v606_v45 }
 0x287   :  { %v926_v57 = vpop.trf.xlu1 }
 0x288   :  { %v765_v58 = vpop.trf.xlu0 }
 0x289   :  { %4133 = vmatprep.mubr.msk.f32.mxu1 %vm456_vm1, %v765_v58  ;;  %4123 = vmatmul.mubr.msk.f32.gmra.mrb[12].mxu0 %vm456_vm1, %v607_v47 }
 0x28a   :  { %4125 = vmatprep.mubr.msk.f32.mxu0 %vm456_vm1, %v608_v49 }
 0x28b   :  { %v927_v59 = vpop.trf.xlu1 }
 0x28c   :  { %v766_v60 = vpop.trf.xlu0 }
 0x28d   :  { %4134 = vmatmul.mubr.msk.f32.gmra.mrb[18].mxu1 %vm456_vm1, %v766_v60  ;;  %4126 = vmatmul.mubr.msk.f32.gmra.mrb[14].mxu0 %vm456_vm1, %v609_v51 }
 0x28e   :  { %4144 = vmatprep.mubr.msk.f32.mxu0 %vm456_vm1, %v924_v53 }
 0x28f   :  { %v928_v61 = vpop.trf.xlu1 }
 0x290   :  { %v767_v62 = vpop.trf.xlu0 }
 0x291   :  { %4136 = vmatprep.mubr.msk.f32.mxu1 %vm456_vm1, %v767_v62  ;;  %4145 = vmatmul.mubr.msk.f32.vlgmr.msra.gmra.mrb[16].mxu0 %vm456_vm1, %v925_v55 }
 0x292   :  { %4147 = vmatprep.mubr.msk.f32.mxu0 %vm456_vm1, %v926_v57 }
 0x293   :  { %v929_v63 = vpop.trf.xlu1 }
 0x294   :  { %v768_v0 = vpop.trf.xlu0 }
 0x295   :  { %4137 = vmatmul.mubr.msk.f32.gmra.mrb[20].mxu1 %vm456_vm1, %v768_v0  ;;  %4148 = vmatmul.mubr.msk.f32.gmra.mrb[18].mxu0 %vm456_vm1, %v927_v59 }
 0x296   :  { %4150 = vmatprep.mubr.msk.f32.mxu0 %vm456_vm1, %v928_v61 }
 0x297   :  { %v930_v1 = vpop.trf.xlu1 }
 0x298   :  { %v769_v2 = vpop.trf.xlu0 }
 0x299   :  { %4139 = vmatprep.mubr.msk.f32.mxu1 %vm456_vm1, %v769_v2  ;;  %4151 = vmatmul.mubr.msk.f32.gmra.mrb[20].mxu0 %vm456_vm1, %v929_v63 }
 0x29a   :  { %4153 = vmatprep.mubr.msk.f32.mxu0 %vm456_vm1, %v930_v1 }
 0x29b   :  { %v931_v4 = vpop.trf.xlu1 }
 0x29c   :  { %v770_v3 = vpop.trf.xlu0 }
 0x29d   :  { %4140 = vmatmul.mubr.msk.f32.gmra.mrb[22].mxu1 %vm456_vm1, %v770_v3  ;;  %4154 = vmatmul.mubr.msk.f32.gmra.mrb[22].mxu0 %vm456_vm1, %v931_v4 }
 0x338   :  { %v5034_v5 = vpop.f32.mrb[0].mxu0 }
 0x339   :  { %v5036_v6 = vpop.f32.mrb[1].mxu0  ;;  %v1073_v7 = vsel %vm1069_vm2, %v5034_v5, -inf }
 0x33a   :  { %1074 = vmax.xlane.f32.xlu1 %v1073_v7  ;;  %v1070_v8 = vsel %vm1069_vm2, %v5036_v6, -inf }
 0x33b   :  { %1071 = vmax.xlane.f32.xlu0 %v1070_v8 }
 0x340   :  { %v5042_v9 = vpop.f32.mrb[2].mxu0 }
 0x341   :  { %v5044_v10 = vpop.f32.mrb[3].mxu0  ;;  %v1079_v26 = vsel %vm1069_vm2, %v5042_v9, -inf }
 0x342   :  { %v1076_v35 = vsel %vm1069_vm2, %v5044_v10, -inf }
 0x348   :  { %v5046_v11 = vpop.f32.mrb[4].mxu0 }
 0x349   :  { %v5048_v12 = vpop.f32.mrb[5].mxu0  ;;  %v1085_v46 = vsel %vm1069_vm2, %v5046_v11, -inf }
 0x34a   :  { %v1082_v42 = vsel %vm1069_vm2, %v5048_v12, -inf }
 0x350   :  { %v5052_v14 = vpop.f32.mrb[6].mxu0 }
 0x351   :  { %v5054_v15 = vpop.f32.mrb[7].mxu0  ;;  %v1091_v56 = vsel %vm1069_vm2, %v5052_v14, -inf }
 0x352   :  { %v1088_v52 = vsel %vm1069_vm2, %v5054_v15, -inf }
 0x354   :  { %v5056_v16 = vpop.f32.mrb[8].mxu0 }
 0x355   :  { %v5058_v17 = vpop.f32.mrb[9].mxu0  ;;  %v1097_v59 = vsel %vm1069_vm2, %v5056_v16, -inf }
 0x356   :  { %v1094_v63 = vsel %vm1069_vm2, %v5058_v17, -inf }
 0x358   :  { %v5060_v18 = vpop.f32.mrb[16].mxu1  ;;  %v5062_v19 = vpop.f32.mrb[10].mxu0 }
 0x359   :  { %v5064_v20 = vpop.f32.mrb[17].mxu1  ;;  %v1121_v21 = vsel %vm1069_vm2, %v5060_v18, -inf  ;;  %v5068_v22 = vpop.f32.mrb[11].mxu0  ;;  %v1103_v2 = vsel %vm1069_vm2, %v5062_v19, -inf }
 0x35a   :  { %1122 = vmax.xlane.f32.xlu0 %v1121_v21  ;;  %v1118_v24 = vsel %vm1069_vm2, %v5064_v20, -inf  ;;  %v1100_v60 = vsel %vm1069_vm2, %v5068_v22, -inf }
 0x35b   :  { %1119 = vmax.xlane.f32.xlu1 %v1118_v24 }
 0x35c   :  { %v5072_v25 = vpop.f32.mrb[12].mxu0 }
 0x35d   :  { %v5076_v27 = vpop.f32.mrb[13].mxu0  ;;  %v1109_v4 = vsel %vm1069_vm2, %v5072_v25, -inf }
 0x35e   :  { %1080 = vmax.xlane.f32.xlu0 %v1079_v26  ;;  %v1106_v62 = vsel %vm1069_vm2, %v5076_v27, -inf }
 0x360   :  { %v5078_v30 = vpop.f32.mrb[18].mxu1  ;;  %v5080_v33 = vpop.f32.mrb[14].mxu0 }
 0x361   :  { %v5082_v34 = vpop.f32.mrb[19].mxu1  ;;  %v5086_v36 = vpop.f32.mrb[15].mxu0  ;;  %v1127_v38 = vsel %vm1069_vm2, %v5078_v30, -inf  ;;  %v1115_v8 = vsel %vm1069_vm2, %v5080_v33, -inf }
 0x362   :  { %1077 = vmax.xlane.f32.xlu0 %v1076_v35  ;;  %v1124_v37 = vsel %vm1069_vm2, %v5082_v34, -inf  ;;  %v1112_v0 = vsel %vm1069_vm2, %v5086_v36, -inf }
 0x363   :  { %1125 = vmax.xlane.f32.xlu1 %v1124_v37 }
 0x364   :  { %v5092_v39 = vpop.f32.mrb[16].mxu0 }
 0x365   :  { %v5094_v41 = vpop.f32.mrb[17].mxu0  ;;  %v1145_v24 = vsel %vm1069_vm2, %v5092_v39, -inf }
 0x366   :  { %1128 = vmax.xlane.f32.xlu0 %v1127_v38  ;;  %v1142_v1 = vsel %vm1069_vm2, %v5094_v41, -inf  ;;  %v6153_v38 = vmov 0.0  }
 0x367   :  { %1083 = vmax.xlane.f32.xlu1 %v1082_v42  ;;  %4172 = vmatprep.mubr.msk.f32.mxu1 %vm4821_vm3, %v6153_v38  ;;  %v5168_v42 = vpop.permute.xlu1 %245 }
 0x368   :  { %v5098_v43 = vpop.f32.mrb[20].mxu1  ;;  %v5100_v44 = vpop.f32.mrb[18].mxu0  ;;  %4191 = vmatprep.mubr.msk.f32.mxu0 %vm4821_vm3, %v6153_v38 }
 0x369   :  { %v5102_v45 = vpop.f32.mrb[21].mxu1  ;;  %v5106_v47 = vpop.f32.mrb[19].mxu0  ;;  %v1133_v49 = vsel %vm1069_vm2, %v5098_v43, -inf  ;;  %v1151_v26 = vsel %vm1069_vm2, %v5100_v44, -inf }
 0x36a   :  { %1086 = vmax.xlane.f32.xlu0 %v1085_v46  ;;  %v1130_v48 = vsel %vm1069_vm2, %v5102_v45, -inf  ;;  %v1148_v3 = vsel %vm1069_vm2, %v5106_v47, -inf }
 0x36b   :  { %1131 = vmax.xlane.f32.xlu1 %v1130_v48  ;;  %v2054_v46 = vpop.permute.xlu1 %2053 }
 0x36c   :  { %v5112_v50 = vpop.f32.mrb[20].mxu0 }
 0x36d   :  { %v5114_v51 = vpop.f32.mrb[21].mxu0  ;;  %v1157_v35 = vsel %vm1069_vm2, %v5112_v50, -inf }
 0x36e   :  { %1134 = vmax.xlane.f32.xlu0 %v1133_v49  ;;  %v1154_v7 = vsel %vm1069_vm2, %v5114_v51, -inf  ;;  %v5172_v49 = vpop.permute.xlu0 %250 }
 0x36f   :  { %1089 = vmax.xlane.f32.xlu1 %v1088_v52  ;;  %v5170_v48 = vpop.permute.xlu1 %255 }
 0x370   :  { %v5118_v53 = vpop.f32.mrb[22].mxu1  ;;  %v5120_v54 = vpop.f32.mrb[22].mxu0 }
 0x371   :  { %v5122_v55 = vpop.f32.mrb[23].mxu1  ;;  %v5126_v57 = vpop.f32.mrb[23].mxu0  ;;  %v1139_v61 = vsel %vm1069_vm2, %v5118_v53, -inf  ;;  %v1163_v37 = vsel %vm1069_vm2, %v5120_v54, -inf }
 0x372   :  { %1092 = vmax.xlane.f32.xlu0 %v1091_v56  ;;  %v1136_v58 = vsel %vm1069_vm2, %v5122_v55, -inf  ;;  %v1160_v21 = vsel %vm1069_vm2, %v5126_v57, -inf  ;;  %v2223_v56 = vpop.permute.xlu0 %2222 }
 0x373   :  { %1137 = vmax.xlane.f32.xlu1 %v1136_v58  ;;  %v5174_v52 = vpop.permute.xlu1 %260 }
 0x376   :  { %1098 = vmax.xlane.f32.xlu0 %v1097_v59  ;;  %v5178_v59 = vpop.permute.xlu0 %2391 }
 0x377   :  { %1101 = vmax.xlane.f32.xlu1 %v1100_v60  ;;  %v5176_v58 = vpop.permute.xlu1 %2560 }
 0x37a   :  { %1140 = vmax.xlane.f32.xlu0 %v1139_v61  ;;  %v5182_v61 = vpop.permute.xlu0 %2089 }
 0x37b   :  { %1107 = vmax.xlane.f32.xlu1 %v1106_v62  ;;  %v5180_v60 = vpop.permute.xlu1 %2258 }
 0x37e   :  { %1095 = vmax.xlane.f32.xlu0 %v1094_v63 }
 0x37f   :  { %1113 = vmax.xlane.f32.xlu1 %v1112_v0 }
 0x382   :  { %1104 = vmax.xlane.f32.xlu0 %v1103_v2 }
 0x383   :  { %1143 = vmax.xlane.f32.xlu1 %v1142_v1 }
 0x386   :  { %1110 = vmax.xlane.f32.xlu0 %v1109_v4 }
 0x387   :  { %1149 = vmax.xlane.f32.xlu1 %v1148_v3 }
 0x38a   :  { %1116 = vmax.xlane.f32.xlu0 %v1115_v8 }
 0x38b   :  { %1155 = vmax.xlane.f32.xlu1 %v1154_v7 }
 0x38e   :  { %1146 = vmax.xlane.f32.xlu0 %v1145_v24 }
 0x38f   :  { %1161 = vmax.xlane.f32.xlu1 %v1160_v21 }
 0x392   :  { %1152 = vmax.xlane.f32.xlu0 %v1151_v26 }
 0x396   :  { %1158 = vmax.xlane.f32.xlu0 %v1157_v35 }
 0x39a   :  { %1164 = vmax.xlane.f32.xlu0 %v1163_v37 }
 0x3c2   :  { %2225 = vxpose.xlu1.b32.start.end [1/1] (short) (narrow) %v2223_v56, 64 }
 0x3c7   :  { %v1075_v62 = vpop.xlane.xlu1 %1074  ;;  %2056 = vxpose.xlu0.b32.start.end [1/1] (short) (narrow) %v2054_v46, 64 }
 0x3c8   :  { %v1167_v63 = vsub.f32 %v5034_v5, %v1075_v62  ;;  %v1072_v0 = vpop.xlane.xlu0 %1071 }
 0x3c9   :  { %v1166_v1 = vsub.f32 %v5036_v6, %v1072_v0 }
 0x3ca   :  { %v1200_v2 = vmul.f32 1.442695, %v1167_v63 }
 0x3cb   :  { %v1198_v3 = vmul.f32 1.442695, %v1166_v1 }
 0x3cc   :  { %4534 = vpow2.f32 %v1200_v2 }
 0x3cd   :  { %4536 = vpow2.f32 %v1198_v3 }
 0x3d6   :  { %v5186_v4 = vpop.eup %4534 }
 0x3d7   :  { %v5188_v7 = vpop.eup %4536 }
 0x3d8   :  { %v4381_v5 = vpack.c.bf16 %v5186_v4, %v5188_v7 }
 0x3da   :  { %4383 = vmatpush3.bf16.xpose.msk.msra.mxu1 %vm5192_vm4, %v4381_v5 }
 0x3db   :  { %4384 = vmatprep.subr.bf16.mxu1 %v6155_v13 }
 0x3e7   :  { %v1123_v6 = vpop.xlane.xlu0 %1122 }
 0x3e8   :  { %v1183_v21 = vsub.f32 %v5060_v18, %v1123_v6  ;;  %v1120_v24 = vpop.xlane.xlu1 %1119 }
 0x3e9   :  { %v1182_v26 = vsub.f32 %v5064_v20, %v1120_v24 }
 0x3ea   :  { %v1232_v35 = vmul.f32 1.442695, %v1183_v21 }
 0x3eb   :  { %v1230_v37 = vmul.f32 1.442695, %v1182_v26  ;;  %v1081_v46 = vpop.xlane.xlu0 %1080 }
 0x3ec   :  { %4538 = vpow2.f32 %v1232_v35  ;;  %v1169_v56 = vsub.f32 %v5042_v9, %v1081_v46 }
 0x3ed   :  { %4540 = vpow2.f32 %v1230_v37 }
 0x3ee   :  { %v1204_v62 = vmul.f32 1.442695, %v1169_v56 }
 0x3ef   :  { %v1078_v63 = vpop.xlane.xlu0 %1077 }
 0x3f0   :  { %v1168_v0 = vsub.f32 %v5044_v10, %v1078_v63  ;;  %v1126_v1 = vpop.xlane.xlu1 %1125  ;;  %4542 = vpow2.f32 %v1204_v62 }
 0x3f1   :  { %v1184_v2 = vsub.f32 %v5082_v34, %v1126_v1 }
 0x3f2   :  { %v1202_v3 = vmul.f32 1.442695, %v1168_v0 }
 0x3f3   :  { %v1234_v18 = vmul.f32 1.442695, %v1184_v2  ;;  %v1129_v5 = vpop.xlane.xlu0 %1128 }
 0x3f4   :  { %4544 = vpow2.f32 %v1202_v3  ;;  %v1185_v20 = vsub.f32 %v5078_v30, %v1129_v5  ;;  %v1084_v6 = vpop.xlane.xlu1 %1083 }
 0x3f5   :  { %v1170_v21 = vsub.f32 %v5048_v12, %v1084_v6  ;;  %4546 = vpow2.f32 %v1234_v18 }
 0x3f6   :  { %v5208_v24 = vpop.eup %4538  ;;  %v1236_v9 = vmul.f32 1.442695, %v1185_v20 }
 0x3f7   :  { %v5210_v26 = vpop.eup %4540  ;;  %v1206_v10 = vmul.f32 1.442695, %v1170_v21  ;;  %v1087_v35 = vpop.xlane.xlu0 %1086 }
 0x3f8   :  { %4548 = vpow2.f32 %v1236_v9  ;;  %v1171_v34 = vsub.f32 %v5046_v11, %v1087_v35  ;;  %v1132_v37 = vpop.xlane.xlu1 %1131  ;;  %v4413_v46 = vpack.c.bf16 %v5208_v24, %v5210_v26 }
 0x3f9   :  { %v1186_v30 = vsub.f32 %v5102_v45, %v1132_v37  ;;  %4550 = vpow2.f32 %v1206_v10 }
 0x3fa   :  { %v1208_v56 = vmul.f32 1.442695, %v1171_v34  ;;  %v5219_v1 = vpop.eup %4542 }
 0x3fb   :  { %v1238_v12 = vmul.f32 1.442695, %v1186_v30  ;;  %v1135_v62 = vpop.xlane.xlu0 %1134 }
 0x3fc   :  { %4552 = vpow2.f32 %v1208_v56  ;;  %v1187_v63 = vsub.f32 %v5098_v43, %v1135_v62  ;;  %v1090_v0 = vpop.xlane.xlu1 %1089  ;;  %2596 = vrot.lane.b32.xlu1 %v4999_v40, %s4819_s29 }
 0x3fd   :  { %v1172_v11 = vsub.f32 %v5054_v15, %v1090_v0  ;;  %4554 = vpow2.f32 %v1238_v12 }
 0x3fe   :  { %v5222_v2 = vpop.eup %4544  ;;  %v1240_v3 = vmul.f32 1.442695, %v1187_v63 }
 0x3ff   :  { %v1210_v45 = vmul.f32 1.442695, %v1172_v11  ;;  %v1093_v18 = vpop.xlane.xlu0 %1092  ;;  %v4385_v5 = vpack.c.bf16 %v5219_v1, %v5222_v2  ;;  %v5227_v6 = vpop.eup %4546 }
 0x400   :  { %4556 = vpow2.f32 %v1240_v3  ;;  %v1173_v43 = vsub.f32 %v5052_v14, %v1093_v18  ;;  %v1138_v20 = vpop.xlane.xlu1 %1137 }
 0x401   :  { %4387 = vmatpush3.bf16.xpose.msk.msra.mxu1 %vm5192_vm4, %v4385_v5  ;;  %4558 = vpow2.f32 %v1210_v45  ;;  %v1188_v21 = vsub.f32 %v5122_v55, %v1138_v20 }
 0x402   :  { %v5231_v40 = vpop.eup %4548  ;;  %v1212_v15 = vmul.f32 1.442695, %v1173_v43  ;;  %4388 = vmatprep.subr.bf16.mxu1 %v6155_v13 }
 0x403   :  { %v1099_v9 = vpop.xlane.xlu0 %1098  ;;  %v4417_v10 = vpack.c.bf16 %v5231_v40, %v5227_v6  ;;  %v5237_v35 = vpop.eup %4550  ;;  %v1242_v37 = vmul.f32 1.442695, %v1188_v21 }
 0x404   :  { %4560 = vpow2.f32 %v1212_v15  ;;  %v1102_v14 = vpop.xlane.xlu1 %1101  ;;  %v1175_v30 = vsub.f32 %v5056_v16, %v1099_v9 }
 0x405   :  { %4562 = vpow2.f32 %v1242_v37  ;;  %v1176_v16 = vsub.f32 %v5068_v22, %v1102_v14 }
 0x406   :  { %v5239_v34 = vpop.eup %4552  ;;  %v1216_v3 = vmul.f32 1.442695, %v1175_v30 }
 0x407   :  { %v1141_v56 = vpop.xlane.xlu0 %1140  ;;  %v4389_v12 = vpack.c.bf16 %v5239_v34, %v5237_v35  ;;  %v5245_v63 = vpop.eup %4554  ;;  %v1218_v21 = vmul.f32 1.442695, %v1176_v16 }
 0x408   :  { %v1189_v62 = vsub.f32 %v5118_v53, %v1141_v56  ;;  %v1108_v55 = vpop.xlane.xlu1 %1107 }
 0x409   :  { %4391 = vmatpush3.bf16.xpose.msk.msra.mxu1 %vm5192_vm4, %v4389_v12  ;;  %v1178_v22 = vsub.f32 %v5076_v27, %v1108_v55 }
 0x40a   :  { %v5249_v0 = vpop.eup %4556  ;;  %v1244_v11 = vmul.f32 1.442695, %v1189_v62  ;;  %4392 = vmatprep.subr.bf16.mxu1 %v6155_v13 }
 0x40b   :  { %v1096_v45 = vpop.xlane.xlu0 %1095  ;;  %v4421_v18 = vpack.c.bf16 %v5249_v0, %v5245_v63  ;;  %v5258_v43 = vpop.eup %4558  ;;  %v1222_v30 = vmul.f32 1.442695, %v1178_v22 }
 0x40c   :  { %4564 = vpow2.f32 %v1244_v11  ;;  %v1174_v53 = vsub.f32 %v5058_v17, %v1096_v45  ;;  %2427 = vrot.lane.b32.xlu0 %v4968_v23, %s4819_s29  ;;  %v1114_v5 = vpop.xlane.xlu1 %1113 }
 0x40d   :  { %4566 = vpow2.f32 %v1216_v3  ;;  %v1180_v56 = vsub.f32 %v5086_v36, %v1114_v5 }
 0x40e   :  { %v5260_v20 = vpop.eup %4560  ;;  %v1214_v15 = vmul.f32 1.442695, %v1174_v53 }
 0x40f   :  { %6174 = vst [vmem:[#allocation5_spill] sm:$0xff] %v5260_v20  ;;  %v1105_v9 = vpop.xlane.xlu0 %1104  ;;  %v4393_v14 = vpack.c.bf16 %v5260_v20, %v5258_v43  ;;  %v5271_v55 = vpop.eup %4562  ;;  %v1226_v16 = vmul.f32 1.442695, %v1180_v56 }
 0x410   :  { %4568 = vpow2.f32 %v1214_v15  ;;  %v1177_v17 = vsub.f32 %v5062_v19, %v1105_v9  ;;  %v1144_v37 = vpop.xlane.xlu1 %1143  ;;  %v5277_v19 = vadd.f32 %v4977_v29, %v5168_v42  ;;  %v1328_v8 = vsel %vm1069_vm2, %v5271_v55, 0.0 }
 0x411   :  { %4395 = vmatpush3.bf16.xpose.msk.msra.mxu1 %vm5192_vm4, %v4393_v14  ;;  %4570 = vpow2.f32 %v1218_v21  ;;  %v1190_v45 = vsub.f32 %v5094_v41, %v1144_v37 }
 0x412   :  { %v1220_v23 = vmul.f32 1.442695, %v1177_v17  ;;  %4412 = vmatprep.subr.bf16.mxu1 %v6155_v13 }
 0x413   :  { %v1111_v12 = vpop.xlane.xlu0 %1110 }
 0x414   :  { %4572 = vpow2.f32 %v1220_v23  ;;  %v1179_v27 = vsub.f32 %v5072_v25, %v1111_v12  ;;  %v1150_v62 = vpop.xlane.xlu1 %1149 }
 0x415   :  { %4574 = vpow2.f32 %v1222_v30  ;;  %v1192_v15 = vsub.f32 %v5106_v47, %v1150_v62 }
 0x416   :  { %v5273_v11 = vpop.eup %4564  ;;  %v1224_v3 = vmul.f32 1.442695, %v1179_v27 }
 0x417   :  { %6175 = vst [vmem:[#allocation6_spill] sm:$0xff] %v5273_v11  ;;  %v1117_v53 = vpop.xlane.xlu0 %1116  ;;  %v4425_v36 = vpack.c.bf16 %v5273_v11, %v5271_v55  ;;  %v5285_v5 = vpop.eup %4566  ;;  %v1250_v37 = vmul.f32 1.442695, %v1192_v15 }
 0x418   :  { %4576 = vpow2.f32 %v1224_v3  ;;  %v1181_v25 = vsub.f32 %v5080_v33, %v1117_v53  ;;  %4173 = vmatmul.mubr.msk.f32.vlgmr.msra.gmra.mrb[24].mxu1 %vm1069_vm2, %v5277_v19  ;;  %v1156_v42 = vpop.xlane.xlu1 %1155  ;;  %v1246_v33 = vmul.f32 1.442695, %v1190_v45 }
 0x419   :  { %4415 = vmatpush3.bf16.xpose.msk.msra.mxu1 %vm5192_vm4, %v4413_v46  ;;  %4210 = vmatprep.mubr.msk.f32.mxu1 %vm4821_vm3, %v6153_v38  ;;  %4578 = vpow2.f32 %v1226_v16  ;;  %v1194_v47 = vsub.f32 %v5114_v51, %v1156_v42 }
 0x41a   :  { %v5294_v29 = vpop.eup %4568  ;;  %v1228_v41 = vmul.f32 1.442695, %v1181_v25  ;;  %4416 = vmatprep.subr.bf16.mxu1 %v6155_v13 }
 0x41b   :  { %v1147_v21 = vpop.xlane.xlu0 %1146  ;;  %v4397_v22 = vpack.c.bf16 %v5285_v5, %v5294_v29  ;;  %v5301_v9 = vpop.eup %4570  ;;  %v1254_v51 = vmul.f32 1.442695, %v1194_v47 }
 0x41c   :  { %4580 = vpow2.f32 %v1228_v41  ;;  %v1191_v46 = vsub.f32 %v5092_v39, %v1147_v21  ;;  %6176 = vst [vmem:[#allocation7_spill] sm:$0xff] %v5301_v9  ;;  %v1162_v39 = vpop.xlane.xlu1 %1161 }
 0x41d   :  { %4399 = vmatpush3.bf16.xpose.msk.msra.mxu0 %vm5192_vm4, %v4397_v22  ;;  %4582 = vpow2.f32 %v1246_v33  ;;  %v1196_v3 = vsub.f32 %v5126_v57, %v1162_v39 }
 0x41e   :  { %v5305_v14 = vpop.eup %4572  ;;  %v1248_v17 = vmul.f32 1.442695, %v1191_v46  ;;  %4400 = vmatprep.subr.bf16.mxu0 %v6155_v13 }
 0x41f   :  { %6177 = vst [vmem:[#allocation8_spill] sm:$0xff] %v5305_v14  ;;  %v1153_v23 = vpop.xlane.xlu0 %1152  ;;  %v4401_v30 = vpack.c.bf16 %v5305_v14, %v5301_v9  ;;  %v5312_v12 = vpop.eup %4574  ;;  %v1258_v57 = vmul.f32 1.442695, %v1196_v3 }
 0x420   :  { %4584 = vpow2.f32 %v1248_v17  ;;  %v1193_v56 = vsub.f32 %v5100_v44, %v1153_v23  ;;  %6178 = vst [vmem:[#allocation9_spill] sm:$0xff] %v5312_v12  ;;  %v5379_v23 = vadd.f32 %v4985_v32, %v5170_v48 }
 0x421   :  { %4419 = vmatpush3.bf16.xpose.msk.msra.mxu1 %vm5192_vm4, %v4417_v10  ;;  %4586 = vpow2.f32 %v1250_v37 }
 0x422   :  { %v5319_v27 = vpop.eup %4576  ;;  %v1252_v62 = vmul.f32 1.442695, %v1193_v56  ;;  %4420 = vmatprep.subr.bf16.mxu1 %v6155_v13 }
 0x423   :  { %6179 = vst [vmem:[#allocation10_spill] sm:$0xff] %v5319_v27  ;;  %v1159_v16 = vpop.xlane.xlu0 %1158  ;;  %v4405_v44 = vpack.c.bf16 %v5319_v27, %v5312_v12  ;;  %v5326_v53 = vpop.eup %4578 }
 0x424   :  { %4588 = vpow2.f32 %v1252_v62  ;;  %v1195_v45 = vsub.f32 %v5112_v50, %v1159_v16  ;;  %6180 = vst [vmem:[#allocation11_spill] sm:$0xff] %v5326_v53  ;;  %v5414_v16 = vadd.f32 %v4983_v31, %v5174_v52 }
 0x425   :  { %2563 = vxpose.xlu1.b32.start.end [1/1] (short) (narrow) %v5176_v58, 64  ;;  %4403 = vmatpush3.bf16.xpose.msk.msra.mxu0 %vm5192_vm4, %v4401_v30  ;;  %4590 = vpow2.f32 %v1254_v51  ;;  %v5389_v30 = vadd.f32 %v4975_v28, %v5172_v49 }
 0x426   :  { %v5331_v10 = vpop.eup %4580  ;;  %v1256_v25 = vmul.f32 1.442695, %v1195_v45  ;;  %4404 = vmatprep.subr.bf16.mxu0 %v6155_v13 }
 0x427   :  { %6181 = vst [vmem:[#allocation12_spill] sm:$0xff] %v5331_v10  ;;  %v1165_v41 = vpop.xlane.xlu0 %1164  ;;  %v4409_v42 = vpack.c.bf16 %v5331_v10, %v5326_v53  ;;  %v5337_v33 = vpop.eup %4582 }
 0x428   :  { %4592 = vpow2.f32 %v1256_v25  ;;  %v1197_v50 = vsub.f32 %v5120_v54, %v1165_v41 }
 0x429   :  { %4423 = vmatpush3.bf16.xpose.msk.msra.mxu1 %vm5192_vm4, %v4421_v18  ;;  %4594 = vpow2.f32 %v1258_v57 }
 0x42a   :  { %v5344_v58 = vpop.eup %4584  ;;  %v1260_v15 = vmul.f32 1.442695, %v1197_v50  ;;  %2394 = vxpose.xlu0.b32.start.end [1/1] (short) (narrow) %v5178_v59, 64  ;;  %4424 = vmatprep.subr.bf16.mxu1 %v6155_v13 }
 0x42b   :  { %6182 = vst [vmem:[#allocation13_spill] sm:$0xff] %v5344_v58  ;;  %v4429_v21 = vpack.c.bf16 %v5344_v58, %v5337_v33  ;;  %v5350_v54 = vpop.eup %4586 }
 0x42c   :  { %4596 = vpow2.f32 %v1260_v15  ;;  %6183 = vst [vmem:[#allocation14_spill] sm:$0xff] %v5350_v54 }
 0x42d   :  { %4407 = vmatpush3.bf16.xpose.msk.msra.mxu0 %vm5192_vm4, %v4405_v44 }
 0x42e   :  { %v5354_v22 = vpop.eup %4588  ;;  %4408 = vmatprep.subr.bf16.mxu0 %v6155_v13 }
 0x42f   :  { %6184 = vst [vmem:[#allocation15_spill] sm:$0xff] %v5354_v22  ;;  %v4433_v18 = vpack.c.bf16 %v5354_v22, %v5350_v54  ;;  %v5359_v59 = vpop.eup %4590 }
 0x430   :  { %6185 = vst [vmem:[#allocation16_spill] sm:$0xff] %v5359_v59 }
 0x431   :  { %4427 = vmatpush3.bf16.xpose.msk.msra.mxu1 %vm5192_vm4, %v4425_v36 }
 0x432   :  { %v5366_v46 = vpop.eup %4592  ;;  %4232 = vmatprep.subr.mxu1 %v5182_v61 }
 0x433   :  { %6186 = vst [vmem:[#allocation17_spill] sm:$0xff] %v5366_v46  ;;  %v4437_v17 = vpack.c.bf16 %v5366_v46, %v5359_v59  ;;  %v5371_v37 = vpop.eup %4594 }
 0x434   :  { %6187 = vst [vmem:[#allocation18_spill] sm:$0xff] %v5371_v37 }
 0x435   :  { %4411 = vmatpush3.bf16.xpose.msk.msra.mxu0 %vm5192_vm4, %v4409_v42 }
 0x436   :  { %v5375_v47 = vpop.eup %4596  ;;  %4428 = vmatprep.subr.bf16.mxu0 %v6155_v13 }
 0x437   :  { %6188 = vst [vmem:[#allocation19_spill] sm:$0xff] %v5375_v47  ;;  %v4441_v36 = vpack.c.bf16 %v5375_v47, %v5371_v37 }
 0x438   :  { %4211 = vmatmul.mubr.msk.f32.vlgmr.msra.gmra.mrb[26].mxu1 %vm1069_vm2, %v5379_v23 }
 0x439   :  { %4233 = vmatpush3.msra.mxu1 %v5182_v61 }
 0x43c   :  { %4192 = vmatmul.mubr.msk.f32.vlgmr.msra.gmra.mrb[24].mxu0 %vm1069_vm2, %v5389_v30 }
 0x43d   :  { %4431 = vmatpush3.bf16.xpose.msk.msra.mxu0 %vm5192_vm4, %v4429_v21  ;;  %4229 = vmatprep.mubr.msk.f32.mxu0 %vm4821_vm3, %v6153_v38 }
 0x43e   :  { %4432 = vmatprep.subr.bf16.mxu0 %v6155_v13 }
 0x442   :  { %v2241_v32 = vpop.trf.xlu1 }
 0x445   :  { %4435 = vmatpush3.bf16.xpose.msk.msra.mxu0 %vm5192_vm4, %v4433_v18 }
 0x446   :  { %4436 = vmatprep.subr.bf16.mxu0 %v6155_v13  ;;  %v2242_v48 = vpop.trf.xlu1 }
 0x447   :  { %v2072_v28 = vpop.trf.xlu0 }
 0x448   :  { %4234 = vmatprep.mubr.msk.f32.mxu1 %vm456_vm1, %v2072_v28 }
 0x44a   :  { %v2243_v49 = vpop.trf.xlu1 }
 0x44b   :  { %v2073_v61 = vpop.trf.xlu0 }
 0x44c   :  { %4235 = vmatmul.mubr.msk.f32.vlgmr.msra.gmra.mrb[28].mxu1 %vm456_vm1, %v2073_v61 }
 0x44d   :  { %4439 = vmatpush3.bf16.xpose.msk.msra.mxu0 %vm5192_vm4, %v4437_v17 }
 0x44e   :  { %4440 = vmatprep.subr.bf16.mxu0 %v6155_v13  ;;  %v2244_v56 = vpop.trf.xlu1 }
 0x44f   :  { %v2074_v39 = vpop.trf.xlu0 }
 0x450   :  { %4237 = vmatprep.mubr.msk.f32.mxu1 %vm456_vm1, %v2074_v39 }
 0x452   :  { %v2245_v51 = vpop.trf.xlu1 }
 0x453   :  { %v2075_v62 = vpop.trf.xlu0 }
 0x454   :  { %4238 = vmatmul.mubr.msk.f32.gmra.mrb[30].mxu1 %vm456_vm1, %v2075_v62 }
 0x455   :  { %4443 = vmatpush3.bf16.xpose.msk.msra.mxu0 %vm5192_vm4, %v4441_v36 }
 0x456   :  { %4246 = vmatprep.subr.mxu0 %v5180_v60  ;;  %v2246_v45 = vpop.trf.xlu1 }
 0x457   :  { %v2076_v3 = vpop.trf.xlu0 }
 0x458   :  { %4240 = vmatprep.mubr.msk.f32.mxu1 %vm456_vm1, %v2076_v3 }
 0x45a   :  { %v2247_v31 = vpop.trf.xlu1 }
 0x45b   :  { %v2077_v44 = vpop.trf.xlu0 }
 0x45c   :  { %4230 = vmatmul.mubr.msk.f32.vlgmr.msra.gmra.mrb[26].mxu0 %vm1069_vm2, %v5414_v16  ;;  %4241 = vmatmul.mubr.msk.f32.gmra.mrb[32].mxu1 %vm456_vm1, %v2077_v44 }
 0x45d   :  { %4247 = vmatpush3.msra.mxu0 %v5180_v60  ;;  %4248 = vmatprep.mubr.msk.f32.mxu0 %vm456_vm1, %v2241_v32 }
 0x45e   :  { %v2248_v57 = vpop.trf.xlu1 }
 0x45f   :  { %v2078_v25 = vpop.trf.xlu0 }
 0x460   :  { %4243 = vmatprep.mubr.msk.f32.mxu1 %vm456_vm1, %v2078_v25  ;;  %4249 = vmatmul.mubr.msk.f32.vlgmr.msra.gmra.mrb[28].mxu0 %vm456_vm1, %v2242_v48 }
 0x461   :  { %4251 = vmatprep.mubr.msk.f32.mxu0 %vm456_vm1, %v2243_v49 }
 0x463   :  { %v2079_v52 = vpop.trf.xlu0 }
 0x464   :  { %4244 = vmatmul.mubr.msk.f32.gmra.mrb[34].mxu1 %vm456_vm1, %v2079_v52  ;;  %4252 = vmatmul.mubr.msk.f32.gmra.mrb[30].mxu0 %vm456_vm1, %v2244_v56 }
 0x465   :  { %4254 = vmatprep.mubr.msk.f32.mxu0 %vm456_vm1, %v2245_v51 }
 0x468   :  { %4255 = vmatmul.mubr.msk.f32.gmra.mrb[32].mxu0 %vm456_vm1, %v2246_v45 }
 0x469   :  { %4257 = vmatprep.mubr.msk.f32.mxu0 %vm456_vm1, %v2247_v31 }
 0x46c   :  { %4258 = vmatmul.mubr.msk.f32.gmra.mrb[34].mxu0 %vm456_vm1, %v2248_v57 }
 0x46e   :  { %v2597_v60 = vpop.permute.xlu1 %2596 }
 0x46f   :  { %4274 = vmatprep.subr.mxu0 %v2597_v60 }
 0x470   :  { %4275 = vmatpush3.msra.mxu0 %v2597_v60 }
 0x471   :  { %4460 = vmatprep.subr.bf16.mxu0 %v6155_v13 }
 0x47e   :  { %v2428_v41 = vpop.permute.xlu0 %2427 }
 0x47f   :  { %4260 = vmatprep.subr.mxu1 %v2428_v41 }
 0x480   :  { %4261 = vmatpush3.msra.mxu1 %v2428_v41 }
 0x481   :  { %4444 = vmatprep.subr.bf16.mxu1 %v6155_v13 }
 0x4a5   :  { %v2579_v42 = vpop.trf.xlu1 }
 0x4a6   :  { %4276 = vmatprep.mubr.msk.f32.mxu0 %vm456_vm1, %v2579_v42 }
 0x4a9   :  { %v2580_v50 = vpop.trf.xlu1 }
 0x4aa   :  { %v2410_v15 = vpop.trf.xlu0  ;;  %4277 = vmatmul.mubr.msk.f32.vlgmr.msra.gmra.mrb[36].mxu0 %vm456_vm1, %v2580_v50 }
 0x4ab   :  { %4262 = vmatprep.mubr.msk.f32.mxu1 %vm456_vm1, %v2410_v15 }
 0x4ad   :  { %v2581_v21 = vpop.trf.xlu1 }
 0x4ae   :  { %v2411_v18 = vpop.trf.xlu0  ;;  %4279 = vmatprep.mubr.msk.f32.mxu0 %vm456_vm1, %v2581_v21 }
 0x4af   :  { %4263 = vmatmul.mubr.msk.f32.vlgmr.msra.gmra.mrb[36].mxu1 %vm456_vm1, %v2411_v18 }
 0x4b1   :  { %v2582_v17 = vpop.trf.xlu1 }
 0x4b2   :  { %v2412_v36 = vpop.trf.xlu0  ;;  %4280 = vmatmul.mubr.msk.f32.gmra.mrb[38].mxu0 %vm456_vm1, %v2582_v17 }
 0x4b3   :  { %4265 = vmatprep.mubr.msk.f32.mxu1 %vm456_vm1, %v2412_v36 }
 0x4b5   :  { %v2583_v32 = vpop.trf.xlu1 }
 0x4b6   :  { %v2413_v48 = vpop.trf.xlu0  ;;  %4282 = vmatprep.mubr.msk.f32.mxu0 %vm456_vm1, %v2583_v32 }
 0x4b7   :  { %4266 = vmatmul.mubr.msk.f32.gmra.mrb[38].mxu1 %vm456_vm1, %v2413_v48 }
 0x4b9   :  { %v2584_v28 = vpop.trf.xlu1 }
 0x4ba   :  { %v2414_v49 = vpop.trf.xlu0  ;;  %4283 = vmatmul.mubr.msk.f32.gmra.mrb[40].mxu0 %vm456_vm1, %v2584_v28 }
 0x4bb   :  { %4268 = vmatprep.mubr.msk.f32.mxu1 %vm456_vm1, %v2414_v49 }
 0x4bd   :  { %v2585_v61 = vpop.trf.xlu1 }
 0x4be   :  { %v2415_v39 = vpop.trf.xlu0  ;;  %4285 = vmatprep.mubr.msk.f32.mxu0 %vm456_vm1, %v2585_v61 }
 0x4bf   :  { %4269 = vmatmul.mubr.msk.f32.gmra.mrb[40].mxu1 %vm456_vm1, %v2415_v39 }
 0x4c1   :  { %v2586_v56 = vpop.trf.xlu1 }
 0x4c2   :  { %v2416_v62 = vpop.trf.xlu0  ;;  %4286 = vmatmul.mubr.msk.f32.gmra.mrb[42].mxu0 %vm456_vm1, %v2586_v56 }
 0x4c3   :  { %4271 = vmatprep.mubr.msk.f32.mxu1 %vm456_vm1, %v2416_v62  ;;  %4323 = vmatprep.mubr.msk.f32.mxu0 %vm4821_vm3, %v6153_v38 }
 0x4c6   :  { %v2417_v51 = vpop.trf.xlu0 }
 0x4c7   :  { %4272 = vmatmul.mubr.msk.f32.gmra.mrb[42].mxu1 %vm456_vm1, %v2417_v51 }
 0x4c8   :  { %4304 = vmatprep.mubr.msk.f32.mxu1 %vm4821_vm3, %v6153_v38 }
 0x4eb   :  { %v5452_v3 = vpop.f32.mrb[24].mxu1 }
 0x4ec   :  { %6189 = vst [vmem:[#allocation20_spill] sm:$0xff] %v5452_v3  ;;  %v4174_v44 = vpop.f32.mrb[25].mxu1 }
 0x50b   :  { %v5454_v45 = vpop.f32.mrb[26].mxu1 }
 0x50c   :  { %6190 = vst [vmem:[#allocation21_spill] sm:$0xff] %v5454_v45  ;;  %v4212_v25 = vpop.f32.mrb[27].mxu1 }
 0x50f   :  { %v5456_v31 = vpop.f32.mrb[24].mxu0 }
 0x510   :  { %6191 = vst [vmem:[#allocation22_spill] sm:$0xff] %v5456_v31  ;;  %v4193_v52 = vpop.f32.mrb[25].mxu0 }
 0x51f   :  { %v5458_v57 = vpop.f32.mrb[28].mxu1 }
 0x520   :  { %v5460_v60 = vpop.f32.mrb[29].mxu1  ;;  %v2731_v41 = vsel %vm1069_vm2, %v5458_v57, -inf }
 0x521   :  { %2732 = vmax.xlane.f32.xlu1 %v2731_v41  ;;  %v2728_v42 = vsel %vm1069_vm2, %v5460_v60, -inf }
 0x522   :  { %2729 = vmax.xlane.f32.xlu0 %v2728_v42 }
 0x527   :  { %v5466_v50 = vpop.f32.mrb[30].mxu1 }
 0x528   :  { %v5468_v15 = vpop.f32.mrb[31].mxu1  ;;  %v2737_v21 = vsel %vm1069_vm2, %v5466_v50, -inf }
 0x529   :  { %2738 = vmax.xlane.f32.xlu0 %v2737_v21  ;;  %v2734_v18 = vsel %vm1069_vm2, %v5468_v15, -inf }
 0x52a   :  { %2735 = vmax.xlane.f32.xlu1 %v2734_v18 }
 0x52f   :  { %v5474_v17 = vpop.f32.mrb[26].mxu0  ;;  %v5476_v36 = vpop.f32.mrb[32].mxu1 }
 0x530   :  { %6192 = vst [vmem:[#allocation23_spill] sm:$0xff] %v5474_v17  ;;  %v4231_v32 = vpop.f32.mrb[27].mxu0  ;;  %v5478_v48 = vpop.f32.mrb[33].mxu1  ;;  %v2743_v28 = vsel %vm1069_vm2, %v5476_v36, -inf }
 0x531   :  { %2744 = vmax.xlane.f32.xlu0 %v2743_v28  ;;  %v2740_v49 = vsel %vm1069_vm2, %v5478_v48, -inf }
 0x532   :  { %2741 = vmax.xlane.f32.xlu1 %v2740_v49 }
 0x533   :  { %v5484_v61 = vpop.f32.mrb[28].mxu0 }
 0x534   :  { %v5486_v39 = vpop.f32.mrb[29].mxu0 }
 0x535   :  { %v2752_v22 = vsel %vm1069_vm2, %v5486_v39, -inf }
 0x537   :  { %v5488_v56 = vpop.f32.mrb[34].mxu1  ;;  %v5490_v62 = vpop.f32.mrb[30].mxu0 }
 0x538   :  { %v5492_v51 = vpop.f32.mrb[35].mxu1  ;;  %v2749_v44 = vsel %vm1069_vm2, %v5488_v56, -inf  ;;  %v5496_v25 = vpop.f32.mrb[31].mxu0 }
 0x539   :  { %2750 = vmax.xlane.f32.xlu0 %v2749_v44  ;;  %v2746_v52 = vsel %vm1069_vm2, %v5492_v51, -inf  ;;  %v2758_v14 = vsel %vm1069_vm2, %v5496_v25, -inf }
 0x53a   :  { %2747 = vmax.xlane.f32.xlu1 %v2746_v52 }
 0x53b   :  { %v5500_v41 = vpop.f32.mrb[32].mxu0 }
 0x53c   :  { %v5502_v42 = vpop.f32.mrb[33].mxu0 }
 0x53d   :  { %v2764_v54 = vsel %vm1069_vm2, %v5502_v42, -inf }
 0x53f   :  { %v5504_v21 = vpop.f32.mrb[34].mxu0 }
 0x540   :  { %v5506_v18 = vpop.f32.mrb[35].mxu0 }
 0x57d   :  { %v5508_v32 = vpop.f32.mrb[36].mxu0 }
 0x57e   :  { %v5510_v28 = vpop.f32.mrb[37].mxu0  ;;  %v2803_v9 = vsel %vm1069_vm2, %v5508_v32, -inf }
 0x582   :  { %v5512_v49 = vpop.f32.mrb[36].mxu1 }
 0x583   :  { %v5514_v38 = vpop.f32.mrb[37].mxu1  ;;  %v2779_v44 = vsel %vm1069_vm2, %v5512_v49, -inf }
 0x584   :  { %2780 = vmax.xlane.f32.xlu0 %v2779_v44  ;;  %v2776_v52 = vsel %vm1069_vm2, %v5514_v38, -inf }
 0x585   :  { %2777 = vmax.xlane.f32.xlu1 %v2776_v52  ;;  %v5520_v13 = vpop.f32.mrb[38].mxu0 }
 0x586   :  { %v5522_v17 = vpop.f32.mrb[39].mxu0 }
 0x58a   :  { %v5524_v31 = vpop.f32.mrb[38].mxu1 }
 0x58b   :  { %v5526_v45 = vpop.f32.mrb[39].mxu1  ;;  %v2785_v3 = vsel %vm1069_vm2, %v5524_v31, -inf }
 0x58c   :  { %2786 = vmax.xlane.f32.xlu0 %v2785_v3  ;;  %v2782_v47 = vsel %vm1069_vm2, %v5526_v45, -inf }
 0x58d   :  { %2783 = vmax.xlane.f32.xlu1 %v2782_v47  ;;  %v5532_v44 = vpop.f32.mrb[40].mxu0  ;;  %v2755_v47 = vsel %vm1069_vm2, %v5484_v61, -inf }
 0x58e   :  { %v5534_v10 = vpop.f32.mrb[41].mxu0 }
 0x58f   :  { %v2812_v58 = vsel %vm1069_vm2, %v5534_v10, -inf }
 0x592   :  { %v5536_v52 = vpop.f32.mrb[40].mxu1 }
 0x593   :  { %v5538_v37 = vpop.f32.mrb[41].mxu1  ;;  %v2791_v53 = vsel %vm1069_vm2, %v5536_v52, -inf }
 0x594   :  { %2792 = vmax.xlane.f32.xlu0 %v2791_v53  ;;  %v2788_v46 = vsel %vm1069_vm2, %v5538_v37, -inf }
 0x595   :  { %2789 = vmax.xlane.f32.xlu1 %v2788_v46  ;;  %v5544_v3 = vpop.f32.mrb[42].mxu0 }
 0x596   :  { %v5546_v27 = vpop.f32.mrb[43].mxu0 }
 0x598   :  { %2756 = vmax.xlane.f32.xlu0 %v2755_v47  ;;  %v2761_v47 = vsel %vm1069_vm2, %v5490_v62, -inf }
 0x59a   :  { %v5550_v59 = vpop.f32.mrb[42].mxu1 }
 0x59b   :  { %v5552_v12 = vpop.f32.mrb[43].mxu1  ;;  %v2797_v46 = vsel %vm1069_vm2, %v5550_v59, -inf }
 0x59c   :  { %2753 = vmax.xlane.f32.xlu0 %v2752_v22  ;;  %v2794_v53 = vsel %vm1069_vm2, %v5552_v12, -inf  ;;  %v2767_v22 = vsel %vm1069_vm2, %v5500_v41, -inf }
 0x59d   :  { %2795 = vmax.xlane.f32.xlu1 %v2794_v53  ;;  %v2770_v53 = vsel %vm1069_vm2, %v5506_v18, -inf }
 0x5a0   :  { %2798 = vmax.xlane.f32.xlu0 %v2797_v46  ;;  %v2773_v46 = vsel %vm1069_vm2, %v5504_v21, -inf }
 0x5a1   :  { %2759 = vmax.xlane.f32.xlu1 %v2758_v14  ;;  %v2800_v14 = vsel %vm1069_vm2, %v5510_v28, -inf }
 0x5a4   :  { %2762 = vmax.xlane.f32.xlu0 %v2761_v47 }
 0x5a5   :  { %2765 = vmax.xlane.f32.xlu1 %v2764_v54 }
 0x5a8   :  { %2768 = vmax.xlane.f32.xlu0 %v2767_v22 }
 0x5a9   :  { %2771 = vmax.xlane.f32.xlu1 %v2770_v53  ;;  %v2806_v53 = vsel %vm1069_vm2, %v5522_v17, -inf }
 0x5ac   :  { %2774 = vmax.xlane.f32.xlu0 %v2773_v46 }
 0x5ad   :  { %2801 = vmax.xlane.f32.xlu1 %v2800_v14 }
 0x5ae   :  { %v2733_v47 = vpop.xlane.xlu1 %2732 }
 0x5af   :  { %v2825_v11 = vsub.f32 %v5458_v57, %v2733_v47  ;;  %v2730_v54 = vpop.xlane.xlu0 %2729  ;;  %v2809_v57 = vsel %vm1069_vm2, %v5520_v13, -inf  ;;  %v2815_v47 = vsel %vm1069_vm2, %v5532_v44, -inf }
 0x5b0   :  { %v2824_v22 = vsub.f32 %v5460_v60, %v2730_v54  ;;  %2804 = vmax.xlane.f32.xlu0 %v2803_v9 }
 0x5b1   :  { %v2858_v20 = vmul.f32 1.442695, %v2825_v11  ;;  %2807 = vmax.xlane.f32.xlu1 %v2806_v53 }
 0x5b2   :  { %v2856_v46 = vmul.f32 1.442695, %v2824_v22 }
 0x5b3   :  { %4598 = vpow2.f32 %v2858_v20  ;;  %v2821_v20 = vsel %vm1069_vm2, %v5544_v3, -inf }
 0x5b4   :  { %4600 = vpow2.f32 %v2856_v46  ;;  %2810 = vmax.xlane.f32.xlu0 %v2809_v57 }
 0x5b5   :  { %2813 = vmax.xlane.f32.xlu1 %v2812_v58 }
 0x5b6   :  { %v2739_v14 = vpop.xlane.xlu0 %2738 }
 0x5b7   :  { %v2827_v60 = vsub.f32 %v5466_v50, %v2739_v14  ;;  %v2736_v9 = vpop.xlane.xlu1 %2735 }
 0x5b8   :  { %v2826_v11 = vsub.f32 %v5468_v15, %v2736_v9  ;;  %2816 = vmax.xlane.f32.xlu0 %v2815_v47  ;;  %v6193_v47 = vmov 0.0|0.0  }
 0x5b9   :  { %v2862_v54 = vmul.f32 1.442695, %v2827_v60 }
 0x5ba   :  { %v2860_v22 = vmul.f32 1.442695, %v2826_v11 }
 0x5bb   :  { %4602 = vpow2.f32 %v2862_v54 }
 0x5bc   :  { %4604 = vpow2.f32 %v2860_v22  ;;  %2822 = vmax.xlane.f32.xlu0 %v2821_v20 }
 0x5bd   :  { %v5590_v53 = vpop.eup %4598 }
 0x5be   :  { %v4601_v58 = vpop.eup %4600  ;;  %v2745_v46 = vpop.xlane.xlu0 %2744 }
 0x5bf   :  { %v2829_v50 = vsub.f32 %v5476_v36, %v2745_v46  ;;  %v2742_v57 = vpop.xlane.xlu1 %2741  ;;  %v4445_v14 = vpack.c.bf16 %v5590_v53, %v4601_v58 }
 0x5c0   :  { %v2828_v15 = vsub.f32 %v5478_v48, %v2742_v57 }
 0x5c1   :  { %v2866_v9 = vmul.f32 1.442695, %v2829_v50  ;;  %4447 = vmatpush3.bf16.xpose.msk.msra.mxu1 %vm5192_vm4, %v4445_v14 }
 0x5c2   :  { %v2864_v60 = vmul.f32 1.442695, %v2828_v15  ;;  %4448 = vmatprep.subr.bf16.mxu1 %v6193_v47 }
 0x5c3   :  { %4606 = vpow2.f32 %v2866_v9 }
 0x5c4   :  { %4608 = vpow2.f32 %v2864_v60  ;;  %v2818_v60 = vsel %vm1069_vm2, %v5546_v27, -inf }
 0x5c5   :  { %v5598_v11 = vpop.eup %4602 }
 0x5c6   :  { %v5600_v54 = vpop.eup %4604  ;;  %3016 = vrot.lane.b32.xlu1 %v5277_v19, %s4819_s29  ;;  %v2751_v36 = vpop.xlane.xlu0 %2750 }
 0x5c7   :  { %v2831_v20 = vsub.f32 %v5488_v56, %v2751_v36  ;;  %v2748_v48 = vpop.xlane.xlu1 %2747  ;;  %v4449_v22 = vpack.c.bf16 %v5598_v11, %v5600_v54  ;;  %v2920_v36 = vsel %vm1069_vm2, %v4601_v58, 0.0 }
 0x5c8   :  { %v2830_v46 = vsub.f32 %v5492_v51, %v2748_v48 }
 0x5c9   :  { %v2870_v50 = vmul.f32 1.442695, %v2831_v20  ;;  %4451 = vmatpush3.bf16.xpose.msk.msra.mxu1 %vm5192_vm4, %v4449_v22 }
 0x5ca   :  { %v2868_v57 = vmul.f32 1.442695, %v2830_v46  ;;  %4452 = vmatprep.subr.bf16.mxu1 %v6193_v47 }
 0x5cb   :  { %4610 = vpow2.f32 %v2870_v50 }
 0x5cc   :  { %4612 = vpow2.f32 %v2868_v57 }
 0x5cd   :  { %v5611_v14 = vpop.eup %4606 }
 0x5ce   :  { %v5613_v19 = vpop.eup %4608 }
 0x5cf   :  { %v4453_v56 = vpack.c.bf16 %v5611_v14, %v5613_v19 }
 0x5d1   :  { %4455 = vmatpush3.bf16.xpose.msk.msra.mxu1 %vm5192_vm4, %v4453_v56 }
 0x5d2   :  { %3114 = vrot.lane.b32.xlu0 %v5389_v30, %s4819_s29  ;;  %4456 = vmatprep.subr.bf16.mxu1 %v6193_v47  ;;  %v1265_v30 = vsel %vm1069_vm2, %v5186_v4, 0.0 }
 0x5d5   :  { %v5622_v51 = vpop.eup %4610 }
 0x5d6   :  { %v5624_v15 = vpop.eup %4612 }
 0x5d7   :  { %v4457_v9 = vpack.c.bf16 %v5622_v51, %v5624_v15 }
 0x5d9   :  { %4459 = vmatpush3.bf16.xpose.msk.msra.mxu1 %vm5192_vm4, %v4457_v9 }
 0x5da   :  { %4476 = vmatprep.subr.bf16.mxu1 %v6193_v47 }
 0x5ea   :  { %2819 = vmax.xlane.f32.xlu1 %v2818_v60 }
 0x5f1   :  { %1266 = vadd.xlane.f32.xlu0 %v1265_v30 }
 0x5f5   :  { %2921 = vadd.xlane.f32.xlu0 %v2920_v36 }
 0x5fb   :  { %3212 = vrot.lane.b32.xlu1 %v5379_v23, %s4819_s29 }
 0x5ff   :  { %3310 = vrot.lane.b32.xlu1 %v5414_v16, %s4819_s29 }
 0x611   :  { %v2781_v20 = vpop.xlane.xlu0 %2780 }
 0x612   :  { %v2841_v48 = vsub.f32 %v5512_v49, %v2781_v20  ;;  %v2778_v22 = vpop.xlane.xlu1 %2777 }
 0x613   :  { %v2840_v46 = vsub.f32 %v5514_v38, %v2778_v22 }
 0x614   :  { %v2890_v50 = vmul.f32 1.442695, %v2841_v48 }
 0x615   :  { %v2888_v57 = vmul.f32 1.442695, %v2840_v46 }
 0x616   :  { %4614 = vpow2.f32 %v2890_v50 }
 0x617   :  { %4616 = vpow2.f32 %v2888_v57 }
 0x619   :  { %v2787_v4 = vpop.xlane.xlu0 %2786 }
 0x61a   :  { %v2843_v58 = vsub.f32 %v5524_v31, %v2787_v4  ;;  %v2784_v56 = vpop.xlane.xlu1 %2783  ;;  %v1262_v31 = vsel %vm1069_vm2, %v5188_v7, 0.0 }
 0x61b   :  { %v2842_v9 = vsub.f32 %v5526_v45, %v2784_v56 }
 0x61c   :  { %v2894_v23 = vmul.f32 1.442695, %v2843_v58 }
 0x61d   :  { %v2892_v60 = vmul.f32 1.442695, %v2842_v9 }
 0x61e   :  { %4618 = vpow2.f32 %v2894_v23  ;;  %v2923_v23 = vsel %vm1069_vm2, %v5590_v53, 0.0 }
 0x61f   :  { %4620 = vpow2.f32 %v2892_v60 }
 0x620   :  { %v5644_v16 = vpop.eup %4614 }
 0x621   :  { %v5646_v49 = vpop.eup %4616  ;;  %v2793_v30 = vpop.xlane.xlu0 %2792  ;;  %v2971_v38 = vsel %vm1069_vm2, %v5644_v16, 0.0 }
 0x622   :  { %v2845_v36 = vsub.f32 %v5536_v52, %v2793_v30  ;;  %v2790_v20 = vpop.xlane.xlu1 %2789  ;;  %2972 = vadd.xlane.f32.xlu0 %v2971_v38  ;;  %v4477_v45 = vpack.c.bf16 %v5644_v16, %v5646_v49  ;;  %v1286_v52 = vsel %vm1069_vm2, %v5294_v29, 0.0 }
 0x623   :  { %v2844_v48 = vsub.f32 %v5538_v37, %v2790_v20  ;;  %1263 = vadd.xlane.f32.xlu1 %v1262_v31 }
 0x624   :  { %v2898_v22 = vmul.f32 1.442695, %v2845_v36 }
 0x625   :  { %v2896_v46 = vmul.f32 1.442695, %v2844_v48  ;;  %v2757_v50 = vpop.xlane.xlu0 %2756 }
 0x626   :  { %4622 = vpow2.f32 %v2898_v22  ;;  %v2833_v57 = vsub.f32 %v5484_v61, %v2757_v50 }
 0x627   :  { %4624 = vpow2.f32 %v2896_v46  ;;  %1287 = vadd.xlane.f32.xlu1 %v1286_v52 }
 0x628   :  { %v5659_v4 = vpop.eup %4618  ;;  %v2874_v7 = vmul.f32 1.442695, %v2833_v57 }
 0x629   :  { %v5661_v58 = vpop.eup %4620  ;;  %v2754_v56 = vpop.xlane.xlu0 %2753 }
 0x62a   :  { %4626 = vpow2.f32 %v2874_v7  ;;  %v2832_v37 = vsub.f32 %v5486_v39, %v2754_v56  ;;  %v2796_v9 = vpop.xlane.xlu1 %2795  ;;  %v4481_v61 = vpack.c.bf16 %v5659_v4, %v5661_v58  ;;  %v2929_v39 = vsel %vm1069_vm2, %v5598_v11, 0.0 }
 0x62b   :  { %v2846_v29 = vsub.f32 %v5552_v12, %v2796_v9  ;;  %2924 = vadd.xlane.f32.xlu1 %v2923_v23 }
 0x62c   :  { %v2872_v60 = vmul.f32 1.442695, %v2832_v37 }
 0x62d   :  { %v2900_v30 = vmul.f32 1.442695, %v2846_v29  ;;  %v2799_v38 = vpop.xlane.xlu0 %2798 }
 0x62e   :  { %4628 = vpow2.f32 %v2872_v60  ;;  %v2847_v36 = vsub.f32 %v5550_v59, %v2799_v38  ;;  %v2760_v20 = vpop.xlane.xlu1 %2759  ;;  %v2926_v59 = vsel %vm1069_vm2, %v5600_v54, 0.0  ;;  %v2935_v54 = vsel %vm1069_vm2, %v5611_v14, 0.0 }
 0x62f   :  { %v2834_v31 = vsub.f32 %v5496_v25, %v2760_v20  ;;  %2930 = vadd.xlane.f32.xlu1 %v2929_v39  ;;  %4630 = vpow2.f32 %v2900_v30 }
 0x630   :  { %v5673_v53 = vpop.eup %4622  ;;  %v2902_v48 = vmul.f32 1.442695, %v2847_v36 }
 0x631   :  { %v5675_v22 = vpop.eup %4624  ;;  %v2876_v12 = vmul.f32 1.442695, %v2834_v31  ;;  %v2763_v46 = vpop.xlane.xlu0 %2762  ;;  %v2932_v31 = vsel %vm1069_vm2, %v5613_v19, 0.0 }
 0x632   :  { %4632 = vpow2.f32 %v2902_v48  ;;  %v2835_v50 = vsub.f32 %v5490_v62, %v2763_v46  ;;  %v2766_v57 = vpop.xlane.xlu1 %2765  ;;  %v4485_v11 = vpack.c.bf16 %v5673_v53, %v5675_v22 }
 0x633   :  { %v2836_v25 = vsub.f32 %v5502_v42, %v2766_v57  ;;  %2927 = vadd.xlane.f32.xlu1 %v2926_v59  ;;  %4634 = vpow2.f32 %v2876_v12 }
 0x634   :  { %v4627_v52 = vpop.eup %4626  ;;  %v2878_v7 = vmul.f32 1.442695, %v2835_v50 }
 0x635   :  { %v2880_v56 = vmul.f32 1.442695, %v2836_v25  ;;  %v2769_v37 = vpop.xlane.xlu0 %2768  ;;  %v2947_v9 = vsel %vm1069_vm2, %v4627_v52, 0.0 }
 0x636   :  { %4636 = vpow2.f32 %v2878_v7  ;;  %v2837_v62 = vsub.f32 %v5500_v41, %v2769_v37  ;;  %v2772_v23 = vpop.xlane.xlu1 %2771  ;;  %2948 = vadd.xlane.f32.xlu0 %v2947_v9 }
 0x637   :  { %v2838_v29 = vsub.f32 %v5506_v18, %v2772_v23  ;;  %2936 = vadd.xlane.f32.xlu1 %v2935_v54  ;;  %4638 = vpow2.f32 %v2880_v56 }
 0x638   :  { %v4629_v42 = vpop.eup %4628  ;;  %v2882_v60 = vmul.f32 1.442695, %v2837_v62 }
 0x639   :  { %v2884_v30 = vmul.f32 1.442695, %v2838_v29  ;;  %v2775_v38 = vpop.xlane.xlu0 %2774  ;;  %v2944_v36 = vsel %vm1069_vm2, %v4629_v42, 0.0  ;;  %v4461_v20 = vpack.c.bf16 %v4627_v52, %v4629_v42  ;;  %v5692_v14 = vpop.eup %4630 }
 0x63a   :  { %4640 = vpow2.f32 %v2882_v60  ;;  %v2839_v39 = vsub.f32 %v5504_v21, %v2775_v38  ;;  %v2802_v41 = vpop.xlane.xlu1 %2801  ;;  %2945 = vadd.xlane.f32.xlu0 %v2944_v36 }
 0x63b   :  { %v2848_v18 = vsub.f32 %v5510_v28, %v2802_v41  ;;  %2933 = vadd.xlane.f32.xlu1 %v2932_v31  ;;  %4463 = vmatpush3.bf16.xpose.msk.msra.mxu0 %vm5192_vm4, %v4461_v20  ;;  %4642 = vpow2.f32 %v2884_v30  ;;  %v2941_v28 = vsel %vm1069_vm2, %v5622_v51, 0.0  ;;  %v2938_v51 = vsel %vm1069_vm2, %v5624_v15, 0.0 }
 0x63c   :  { %v5697_v48 = vpop.eup %4632  ;;  %v2886_v12 = vmul.f32 1.442695, %v2839_v39  ;;  %4464 = vmatprep.subr.bf16.mxu0 %v6193_v47  ;;  %v6194_v31 = vmov 0.0  }
 0x63d   :  { %v2904_v21 = vmul.f32 1.442695, %v2848_v18  ;;  %v2805_v46 = vpop.xlane.xlu0 %2804  ;;  %v4489_v50 = vpack.c.bf16 %v5697_v48, %v5692_v14  ;;  %v4635_v59 = vpop.eup %4634 }
 0x63e   :  { %4644 = vpow2.f32 %v2886_v12  ;;  %v2849_v19 = vsub.f32 %v5508_v32, %v2805_v46  ;;  %v2808_v57 = vpop.xlane.xlu1 %2807  ;;  %v2977_v12 = vsel %vm1069_vm2, %v5659_v4, 0.0  ;;  %v2974_v46 = vsel %vm1069_vm2, %v5661_v58, 0.0 }
 0x63f   :  { %v2850_v25 = vsub.f32 %v5522_v17, %v2808_v57  ;;  %2942 = vadd.xlane.f32.xlu1 %v2941_v28  ;;  %4646 = vpow2.f32 %v2904_v21 }
 0x640   :  { %v4637_v52 = vpop.eup %4636  ;;  %v2906_v7 = vmul.f32 1.442695, %v2849_v19 }
 0x641   :  { %v2908_v56 = vmul.f32 1.442695, %v2850_v25  ;;  %v2811_v37 = vpop.xlane.xlu0 %2810  ;;  %v2953_v9 = vsel %vm1069_vm2, %v4637_v52, 0.0  ;;  %v4465_v62 = vpack.c.bf16 %v4637_v52, %v4635_v59  ;;  %v4639_v54 = vpop.eup %4638  ;;  %v2983_v25 = vsel %vm1069_vm2, %v5673_v53, 0.0 }
 0x642   :  { %4648 = vpow2.f32 %v2906_v7  ;;  %v2851_v23 = vsub.f32 %v5520_v13, %v2811_v37  ;;  %v2814_v32 = vpop.xlane.xlu1 %2813  ;;  %2954 = vadd.xlane.f32.xlu0 %v2953_v9  ;;  %v2950_v13 = vsel %vm1069_vm2, %v4635_v59, 0.0 }
 0x643   :  { %v2852_v17 = vsub.f32 %v5534_v10, %v2814_v32  ;;  %2939 = vadd.xlane.f32.xlu1 %v2938_v51  ;;  %4467 = vmatpush3.bf16.xpose.msk.msra.mxu0 %vm5192_vm4, %v4465_v62  ;;  %4650 = vpow2.f32 %v2908_v56  ;;  %v2968_v10 = vsel %vm1069_vm2, %v5646_v49, 0.0  ;;  %v2956_v49 = vsel %vm1069_vm2, %v4639_v54, 0.0 }
 0x644   :  { %v4641_v29 = vpop.eup %4640  ;;  %v2910_v42 = vmul.f32 1.442695, %v2851_v23  ;;  %4468 = vmatprep.subr.bf16.mxu0 %v6193_v47  ;;  %v2989_v23 = vsel %vm1069_vm2, %v5697_v48, 0.0 }
 0x645   :  { %v2912_v60 = vmul.f32 1.442695, %v2852_v17  ;;  %v2817_v30 = vpop.xlane.xlu0 %2816  ;;  %v4469_v38 = vpack.c.bf16 %v4641_v29, %v4639_v54  ;;  %v4643_v20 = vpop.eup %4642  ;;  %v1334_v54 = vsel %vm1069_vm2, %v5337_v33, 0.0  ;;  %v1271_v33 = vsel %vm1069_vm2, %v5219_v1, 0.0 }
 0x646   :  { %4652 = vpow2.f32 %v2910_v42  ;;  %v2853_v15 = vsub.f32 %v5532_v44, %v2817_v30  ;;  %v3017_v36 = vpop.permute.xlu1 %3016  ;;  %2951 = vadd.xlane.f32.xlu0 %v2950_v13  ;;  %v2959_v44 = vsel %vm1069_vm2, %v4641_v29, 0.0  ;;  %v2962_v4 = vsel %vm1069_vm2, %v4643_v20, 0.0 }
 0x647   :  { %4305 = vmatmul.mubr.msk.f32.vlgmr.msra.gmra.mrb[44].mxu1 %vm1069_vm2, %v3017_v36  ;;  %2969 = vadd.xlane.f32.xlu1 %v2968_v10  ;;  %4654 = vpow2.f32 %v2912_v60  ;;  %v1316_v29 = vsel %vm1069_vm2, %v5227_v6, 0.0  ;;  %v1322_v1 = vsel %vm1069_vm2, %v5245_v63, 0.0  ;;  %v1289_v63 = vsel %vm1069_vm2, %v5285_v5, 0.0  ;;  %v6196_v5 = vld [vmem:[#allocation5_spill] sm:$0xff] }
 0x648   :  { %v4645_v39 = vpop.eup %4644  ;;  %v2914_v41 = vmul.f32 1.442695, %v2853_v15  ;;  %4479 = vmatpush3.bf16.xpose.msk.msra.mxu1 %vm5192_vm4, %v4477_v45  ;;  %4342 = vmatprep.mubr.msk.f32.mxu1 %vm4821_vm3, %v6194_v31  ;;  %v1280_v15 = vsel %vm1069_vm2, %v5258_v43, 0.0  ;;  %v1313_v36 = vsel %vm1069_vm2, %v5208_v24, 0.0  ;;  %v6197_v43 = vld [vmem:[#allocation7_spill] sm:$0xff]  ;;  %v6198_v24 = vld [vmem:[#allocation6_spill] sm:$0xff] }
 0x649   :  { %4480 = vmatprep.subr.bf16.mxu1 %v6193_v47  ;;  %v4473_v18 = vpack.c.bf16 %v4645_v39, %v4643_v20  ;;  %v4647_v21 = vpop.eup %4646  ;;  %v2965_v28 = vsel %vm1069_vm2, %v4645_v39, 0.0  ;;  %v2823_v7 = vpop.xlane.xlu0 %2822  ;;  %v1283_v20 = vsel %vm1069_vm2, %v6196_v5, 0.0  ;;  %v1292_v39 = vsel %vm1069_vm2, %v6197_v43, 0.0 }
 0x64a   :  { %4656 = vpow2.f32 %v2914_v41  ;;  %2960 = vadd.xlane.f32.xlu0 %v2959_v44  ;;  %v2855_v37 = vsub.f32 %v5544_v3, %v2823_v7  ;;  %v2992_v32 = vsel %vm1069_vm2, %v4647_v21, 0.0  ;;  %v1331_v41 = vsel %vm1069_vm2, %v6198_v24, 0.0  ;;  %v6200_v44 = vld [vmem:[#allocation8_spill] sm:$0xff]  ;;  %v6205_v7 = vld [vmem:[#allocation17_spill] sm:$0xff] }
 0x64b   :  { %2978 = vadd.xlane.f32.xlu1 %v2977_v12  ;;  %4471 = vmatpush3.bf16.xpose.msk.msra.mxu0 %vm5192_vm4, %v4469_v38  ;;  %v6201_v12 = vld [vmem:[#allocation15_spill] sm:$0xff] }
 0x64c   :  { %v4649_v16 = vpop.eup %4648  ;;  %4472 = vmatprep.subr.bf16.mxu0 %v6193_v47  ;;  %v2918_v3 = vmul.f32 1.442695, %v2855_v37  ;;  %v6206_v37 = vld [vmem:[#allocation11_spill] sm:$0xff] }
 0x64d   :  { %v4493_v45 = vpack.c.bf16 %v4649_v16, %v4647_v21  ;;  %v4651_v19 = vpop.eup %4650  ;;  %v3115_v9 = vpop.permute.xlu0 %3114  ;;  %v2995_v62 = vsel %vm1069_vm2, %v4649_v16, 0.0  ;;  %v1343_v21 = vsel %vm1069_vm2, %v6201_v12, 0.0  ;;  %v6202_v16 = vld [vmem:[#allocation9_spill] sm:$0xff] }
 0x64e   :  { %2957 = vadd.xlane.f32.xlu0 %v2956_v49  ;;  %4658 = vpow2.f32 %v2918_v3  ;;  %v1298_v49 = vsel %vm1069_vm2, %v6202_v16, 0.0 }
 0x64f   :  { %2975 = vadd.xlane.f32.xlu1 %v2974_v46 }
 0x650   :  { %v4653_v57 = vpop.eup %4652  ;;  %4483 = vmatpush3.bf16.xpose.msk.msra.mxu1 %vm5192_vm4, %v4481_v61  ;;  %v2980_v61 = vsel %vm1069_vm2, %v5675_v22, 0.0  ;;  %v2986_v22 = vsel %vm1069_vm2, %v5692_v14, 0.0  ;;  %v1310_v14 = vsel %vm1069_vm2, %v5210_v26, 0.0  ;;  %v1268_v26 = vsel %vm1069_vm2, %v5222_v2, 0.0 }
 0x651   :  { %4484 = vmatprep.subr.bf16.mxu1 %v6193_v47  ;;  %v4497_v59 = vpack.c.bf16 %v4653_v57, %v4651_v19  ;;  %v4655_v52 = vpop.eup %4654  ;;  %v3001_v53 = vsel %vm1069_vm2, %v4653_v57, 0.0  ;;  %v1274_v2 = vsel %vm1069_vm2, %v5237_v35, 0.0  ;;  %v1325_v35 = vsel %vm1069_vm2, %v5249_v0, 0.0  ;;  %v6195_v0 = vld [vmem:[#allocation13_spill] sm:$0xff] }
 0x652   :  { %2966 = vadd.xlane.f32.xlu0 %v2965_v28  ;;  %v3004_v48 = vsel %vm1069_vm2, %v4655_v52, 0.0  ;;  %v1337_v10 = vsel %vm1069_vm2, %v6195_v0, 0.0  ;;  %v6204_v28 = vld [vmem:[#allocation10_spill] sm:$0xff] }
 0x653   :  { %2984 = vadd.xlane.f32.xlu1 %v2983_v25  ;;  %4475 = vmatpush3.bf16.xpose.msk.msra.mxu0 %vm5192_vm4, %v4473_v18  ;;  %v1295_v18 = vsel %vm1069_vm2, %v6200_v44, 0.0 }
 0x654   :  { %v4657_v56 = vpop.eup %4656  ;;  %4492 = vmatprep.subr.bf16.mxu0 %v6193_v47 }
 0x655   :  { %v4501_v58 = vpack.c.bf16 %v4657_v56, %v4655_v52  ;;  %v3007_v51 = vsel %vm1069_vm2, %v4657_v56, 0.0  ;;  %v1349_v56 = vsel %vm1069_vm2, %v6205_v7, 0.0 }
 0x656   :  { %2963 = vadd.xlane.f32.xlu0 %v2962_v4 }
 0x657   :  { %2981 = vadd.xlane.f32.xlu1 %v2980_v61 }
 0x658   :  { %4487 = vmatpush3.bf16.xpose.msk.msra.mxu1 %vm5192_vm4, %v4485_v11  ;;  %v2998_v11 = vsel %vm1069_vm2, %v4651_v19, 0.0  ;;  %v1842_v19 = vlaneseq }
 0x659   :  { %4488 = vmatprep.subr.bf16.mxu1 %v6193_v47 }
 0x65a   :  { %2996 = vadd.xlane.f32.xlu0 %v2995_v62  ;;  %4324 = vmatmul.mubr.msk.f32.vlgmr.msra.gmra.mrb[44].mxu0 %vm1069_vm2, %v3115_v9  ;;  %v5840_v25 = vand.u32 127, %v1842_v19  ;;  %v5844_v4 = vshrl.u32 %v1842_v19, 7  ;;  %v1304_v9 = vsel %vm1069_vm2, %v6206_v37, 0.0 }
 0x65b   :  { %2990 = vadd.xlane.f32.xlu1 %v2989_v23  ;;  %4495 = vmatpush3.bf16.xpose.msk.msra.mxu0 %vm5192_vm4, %v4493_v45  ;;  %v6203_v45 = vld [vmem:[#allocation16_spill] sm:$0xff] }
 0x65c   :  { %4496 = vmatprep.subr.bf16.mxu0 %v6193_v47  ;;  %4361 = vmatprep.mubr.msk.f32.mxu0 %vm4821_vm3, %v6194_v31  ;;  %v6199_v31 = vld [vmem:[#allocation14_spill] sm:$0xff]  ;;  %v1346_v46 = vsel %vm1069_vm2, %v6203_v45, 0.0  ;;  %v1855_v12 = vadd.s32 4294967280, %v5840_v25  ;;  %v1876_v7 = vadd.s32 4294967256, %v5840_v25 }
 0x65d   :  { %v1340_v55 = vsel %vm1069_vm2, %v6199_v31, 0.0 }
 0x65e   :  { %3002 = vadd.xlane.f32.xlu0 %v3001_v53  ;;  %v5856_v53 = vsub.s32 %v5840_v25, %v5844_v4  ;;  %v5919_v45 = vsub.s32 %v1855_v12, %v5844_v4 }
 0x65f   :  { %2987 = vadd.xlane.f32.xlu1 %v2986_v22 }
 0x660   :  { %4491 = vmatpush3.bf16.xpose.msk.msra.mxu1 %vm5192_vm4, %v4489_v50  ;;  %v4659_v50 = vpop.eup %4658 }
 0x661   :  { %v3013_v17 = vsel %vm1069_vm2, %v4659_v50, 0.0 }
 0x662   :  { %2999 = vadd.xlane.f32.xlu0 %v2998_v11  ;;  %v6207_v11 = vld [vmem:[#allocation18_spill] sm:$0xff] }
 0x663   :  { %2993 = vadd.xlane.f32.xlu1 %v2992_v32  ;;  %4499 = vmatpush3.bf16.xpose.msk.msra.mxu0 %vm5192_vm4, %v4497_v59  ;;  %v1301_v59 = vsel %vm1069_vm2, %v6204_v28, 0.0  ;;  %v1352_v32 = vsel %vm1069_vm2, %v6207_v11, 0.0 }
 0x664   :  { %4500 = vmatprep.subr.bf16.mxu0 %v6193_v47 }
 0x666   :  { %3008 = vadd.xlane.f32.xlu0 %v3007_v51 }
 0x667   :  { %1311 = vadd.xlane.f32.xlu1 %v1310_v14 }
 0x66a   :  { %3005 = vadd.xlane.f32.xlu0 %v3004_v48 }
 0x66b   :  { %1335 = vadd.xlane.f32.xlu1 %v1334_v54  ;;  %4503 = vmatpush3.bf16.xpose.msk.msra.mxu0 %vm5192_vm4, %v4501_v58  ;;  %v1848_v58 = vadd.s32 4294967288, %v5840_v25 }
 0x66c   :  { %4504 = vmatprep.subr.bf16.mxu0 %v6193_v47  ;;  %v1319_v47 = vsel %vm1069_vm2, %v5231_v40, 0.0 }
 0x66d   :  { %v5852_v62 = vsub.s32 %v1848_v58, %v5844_v4 }
 0x66e   :  { %3014 = vadd.xlane.f32.xlu0 %v3013_v17  ;;  %v6208_v17 = vld [vmem:[#allocation12_spill] sm:$0xff] }
 0x66f   :  { %1269 = vadd.xlane.f32.xlu1 %v1268_v26  ;;  %v1307_v26 = vsel %vm1069_vm2, %v6208_v17, 0.0 }
 0x673   :  { %1317 = vadd.xlane.f32.xlu1 %v1316_v29 }
 0x677   :  { %v2820_v42 = vpop.xlane.xlu1 %2819  ;;  %1272 = vadd.xlane.f32.xlu1 %v1271_v33 }
 0x678   :  { %v2854_v60 = vsub.f32 %v5546_v27, %v2820_v42  ;;  %v1277_v27 = vsel %vm1069_vm2, %v5239_v34, 0.0  ;;  %v6209_v42 = vld [vmem:[#allocation19_spill] sm:$0xff] }
 0x67a   :  { %v2916_v30 = vmul.f32 1.442695, %v2854_v60  ;;  %v1355_v60 = vsel %vm1069_vm2, %v6209_v42, 0.0 }
 0x67b   :  { %v3213_v13 = vpop.permute.xlu1 %3212  ;;  %1320 = vadd.xlane.f32.xlu1 %v1319_v47 }
 0x67c   :  { %4660 = vpow2.f32 %v2916_v30  ;;  %4343 = vmatmul.mubr.msk.f32.vlgmr.msra.gmra.mrb[46].mxu1 %vm1069_vm2, %v3213_v13 }
 0x67e   :  { %v1267_v57 = vpop.xlane.xlu0 %1266 }
 0x67f   :  { %1275 = vadd.xlane.f32.xlu1 %v1274_v2  ;;  %v3311_v34 = vpop.permute.xlu1 %3310  ;;  %4662 = vrcp.f32 %v1267_v57  ;;  %v1862_v57 = vadd.s32 4294967272, %v5840_v25 }
 0x683   :  { %1323 = vadd.xlane.f32.xlu1 %v1322_v1 }
 0x686   :  { %v4661_v6 = vpop.eup %4660 }
 0x687   :  { %1278 = vadd.xlane.f32.xlu1 %v1277_v27  ;;  %v3010_v40 = vsel %vm1069_vm2, %v4661_v6, 0.0  ;;  %v4505_v38 = vpack.c.bf16 %v4659_v50, %v4661_v6  ;;  %v2922_v50 = vpop.xlane.xlu0 %2921 }
 0x688   :  { %3011 = vadd.xlane.f32.xlu0 %v3010_v40 }
 0x689   :  { %4507 = vmatpush3.bf16.xpose.msk.msra.mxu0 %vm5192_vm4, %v4505_v38  ;;  %v4663_v3 = vpop.eup %4662 }
 0x68a   :  { %v1852_v51 = vrot.slane %v4663_v3, %v5852_v62 }
 0x68b   :  { %1326 = vadd.xlane.f32.xlu1 %v1325_v35 }
 0x68c   :  { %1290 = vadd.xlane.f32.xlu0 %v1289_v63 }
 0x68f   :  { %1281 = vadd.xlane.f32.xlu1 %v1280_v15 }
 0x690   :  { %1314 = vadd.xlane.f32.xlu0 %v1313_v36  ;;  %4362 = vmatmul.mubr.msk.f32.vlgmr.msra.gmra.mrb[46].mxu0 %vm1069_vm2, %v3311_v34 }
 0x693   :  { %1329 = vadd.xlane.f32.xlu1 %v1328_v8 }
 0x694   :  { %1338 = vadd.xlane.f32.xlu0 %v1337_v10 }
 0x697   :  { %1284 = vadd.xlane.f32.xlu1 %v1283_v20 }
 0x698   :  { %1293 = vadd.xlane.f32.xlu0 %v1292_v39 }
 0x69b   :  { %1332 = vadd.xlane.f32.xlu1 %v1331_v41 }
 0x69c   :  { %1341 = vadd.xlane.f32.xlu0 %v1340_v55 }
 0x6a0   :  { %1296 = vadd.xlane.f32.xlu0 %v1295_v18 }
 0x6a4   :  { %1344 = vadd.xlane.f32.xlu0 %v1343_v21 }
 0x6a8   :  { %1299 = vadd.xlane.f32.xlu0 %v1298_v49 }
 0x6ac   :  { %1347 = vadd.xlane.f32.xlu0 %v1346_v46  ;;  %v1869_v46 = vadd.s32 4294967264, %v5840_v25 }
 0x6ae   :  { %v5929_v58 = vsub.s32 %v1869_v46, %v5844_v4 }
 0x6af   :  { %v5867_v33 = vpop.xlane.xlu0 %2972 }
 0x6b0   :  { %v1264_v52 = vpop.xlane.xlu1 %1263  ;;  %1302 = vadd.xlane.f32.xlu0 %v1301_v59 }
 0x6b1   :  { %4664 = vrcp.f32 %v1264_v52 }
 0x6b4   :  { %v5847_v61 = vpop.xlane.xlu1 %1287  ;;  %1350 = vadd.xlane.f32.xlu0 %v1349_v56 }
 0x6b8   :  { %v2925_v23 = vpop.xlane.xlu1 %2924  ;;  %1305 = vadd.xlane.f32.xlu0 %v1304_v9  ;;  %v1883_v9 = vadd.s32 4294967248, %v5840_v25 }
 0x6b9   :  { %4666 = vrcp.f32 %v2925_v23 }
 0x6bb   :  { %v4665_v22 = vpop.eup %4664 }
 0x6bc   :  { %v1847_v14 = vrot.slane %v4665_v22, %v5856_v53  ;;  %v2931_v48 = vpop.xlane.xlu1 %2930  ;;  %1353 = vadd.xlane.f32.xlu0 %v1352_v32  ;;  %v5936_v22 = vsub.s32 %v1862_v57, %v5844_v4 }
 0x6be   :  { %v5863_v54 = vsel %vm1853_vm5, %v1852_v51, %v1847_v14  ;;  %v5939_v51 = vsub.s32 %v1876_v7, %v5844_v4 }
 0x6c0   :  { %v2928_v29 = vpop.xlane.xlu1 %2927  ;;  %1308 = vadd.xlane.f32.xlu0 %v1307_v26 }
 0x6c1   :  { %4668 = vrcp.f32 %v2928_v29 }
 0x6c2   :  { %4670 = vrcp.f32 %v2922_v50  ;;  %v5944_v50 = vsub.s32 %v1883_v9, %v5844_v4 }
 0x6c3   :  { %v5871_v47 = vpop.xlane.xlu0 %2948  ;;  %v4667_v49 = vpop.eup %4666 }
 0x6c4   :  { %v2937_v30 = vpop.xlane.xlu1 %2936  ;;  %1356 = vadd.xlane.f32.xlu0 %v1355_v60  ;;  %v3511_v52 = vrot.slane %v4667_v49, %v5852_v62  ;;  %v1890_v60 = vadd.s32 4294967240, %v5840_v25 }
 0x6c6   :  { %v5960_v25 = vsub.s32 %v1890_v60, %v5844_v4 }
 0x6c7   :  { %v2946_v2 = vpop.xlane.xlu0 %2945 }
 0x6c8   :  { %v2934_v13 = vpop.xlane.xlu1 %2933 }
 0x6c9   :  { %4672 = vrcp.f32 %v2934_v13 }
 0x6ca   :  { %4674 = vrcp.f32 %v2931_v48 }
 0x6cb   :  { %v4669_v19 = vpop.eup %4668 }
 0x6cc   :  { %v2943_v1 = vpop.xlane.xlu1 %2942  ;;  %v4671_v59 = vpop.eup %4670  ;;  %v3516_v56 = vrot.slane %v4669_v19, %v5919_v45 }
 0x6cd   :  { %v3507_v3 = vrot.slane %v4671_v59, %v5856_v53 }
 0x6cf   :  { %v5873_v6 = vpop.xlane.xlu0 %2954  ;;  %v3512_v14 = vsel %vm1853_vm5, %v3511_v52, %v3507_v3 }
 0x6d0   :  { %v2940_v27 = vpop.xlane.xlu1 %2939  ;;  %v3517_v17 = vsel %vm1860_vm6, %v3516_v56, %v3512_v14 }
 0x6d1   :  { %4676 = vrcp.f32 %v2940_v27 }
 0x6d2   :  { %4678 = vrcp.f32 %v2937_v30 }
 0x6d3   :  { %v2952_v38 = vpop.xlane.xlu0 %2951  ;;  %4680 = vrcp.f32 %v2943_v1  ;;  %v4673_v23 = vpop.eup %4672 }
 0x6d4   :  { %v5875_v40 = vpop.xlane.xlu1 %2969  ;;  %v4675_v32 = vpop.eup %4674  ;;  %4682 = vrcp.f32 %v2946_v2  ;;  %v3526_v48 = vrot.slane %v4673_v23, %v5929_v58 }
 0x6d5   :  { %4684 = vrcp.f32 %v2952_v38  ;;  %v3521_v29 = vrot.slane %v4675_v32, %v5936_v22 }
 0x6d6   :  { %4686 = vrcp.f32 %v5871_v47 }
 0x6d7   :  { %v5879_v63 = vpop.xlane.xlu0 %2960  ;;  %4688 = vrcp.f32 %v5873_v6  ;;  %v3522_v2 = vsel %vm1867_vm7, %v3521_v29, %v3517_v17 }
 0x6d8   :  { %v5877_v35 = vpop.xlane.xlu1 %2978  ;;  %4690 = vrcp.f32 %v5879_v63  ;;  %v3527_v1 = vsel %vm1874_vm8, %v3526_v48, %v3522_v2 }
 0x6db   :  { %v5885_v36 = vpop.xlane.xlu0 %2957  ;;  %v4677_v26 = vpop.eup %4676 }
 0x6dc   :  { %v5881_v15 = vpop.xlane.xlu1 %2975  ;;  %v4679_v30 = vpop.eup %4678  ;;  %4692 = vrcp.f32 %v5885_v36  ;;  %v3536_v47 = vrot.slane %v4677_v26, %v5944_v50 }
 0x6dd   :  { %v3531_v6 = vrot.slane %v4679_v30, %v5939_v51  ;;  %v4681_v38 = vpop.eup %4680 }
 0x6de   :  { %v4683_v12 = vpop.eup %4682  ;;  %v3541_v49 = vrot.slane %v4681_v38, %v5960_v25 }
 0x6df   :  { %v5889_v0 = vpop.xlane.xlu0 %2966  ;;  %v3532_v36 = vsel %vm1881_vm9, %v3531_v6, %v3527_v1  ;;  %v4685_v46 = vpop.eup %4684  ;;  %v3546_v59 = vrot.slane %v4683_v12, %v5856_v53 }
 0x6e0   :  { %v5883_v34 = vpop.xlane.xlu1 %2984  ;;  %4694 = vrcp.f32 %v5889_v0  ;;  %v3537_v0 = vsel %vm1888_vm10, %v3536_v47, %v3532_v36  ;;  %v4687_v19 = vpop.eup %4686  ;;  %v3555_v56 = vrot.slane %v4685_v46, %v5919_v45 }
 0x6e1   :  { %v4689_v57 = vpop.eup %4688  ;;  %v3550_v23 = vrot.slane %v4687_v19, %v5852_v62 }
 0x6e2   :  { %v4691_v7 = vpop.eup %4690  ;;  %v3560_v29 = vrot.slane %v4689_v57, %v5936_v22 }
 0x6e3   :  { %v5895_v20 = vpop.xlane.xlu0 %2963 }
 0x6e4   :  { %v5887_v8 = vpop.xlane.xlu1 %2981  ;;  %4696 = vrcp.f32 %v5895_v20 }
 0x6e6   :  { %v4693_v9 = vpop.eup %4692 }
 0x6e7   :  { %v5899_v39 = vpop.xlane.xlu0 %2996  ;;  %v3565_v48 = vrot.slane %v4693_v9, %v5929_v58 }
 0x6e8   :  { %v5891_v10 = vpop.xlane.xlu1 %2990 }
 0x6ea   :  { %v4695_v3 = vpop.eup %4694 }
 0x6eb   :  { %v5905_v31 = vpop.xlane.xlu0 %3002 }
 0x6ec   :  { %v5893_v5 = vpop.xlane.xlu1 %2987 }
 0x6ee   :  { %v4697_v32 = vpop.eup %4696 }
 0x6ef   :  { %v5909_v44 = vpop.xlane.xlu0 %2999  ;;  %v3575_v6 = vrot.slane %v4697_v32, %v5944_v50 }
 0x6f0   :  { %v5897_v43 = vpop.xlane.xlu1 %2993 }
 0x6f3   :  { %v5916_v16 = vpop.xlane.xlu0 %3008 }
 0x6f4   :  { %v5901_v24 = vpop.xlane.xlu1 %1311 }
 0x6f5   :  { %4698 = vrcp.f32 %v5901_v24 }
 0x6f7   :  { %v5931_v37 = vpop.xlane.xlu0 %3005 }
 0x6f8   :  { %v5903_v41 = vpop.xlane.xlu1 %1335 }
 0x6f9   :  { %4700 = vrcp.f32 %v5903_v41  ;;  %v3542_v41 = vsel %vm1895_vm11, %v3541_v49, %v3537_v0  ;;  %v3570_v0 = vrot.slane %v4691_v7, %v5939_v51 }
 0x6fb   :  { %v5951_v13 = vpop.xlane.xlu0 %3014 }
 0x6fc   :  { %v5907_v55 = vpop.xlane.xlu1 %1269 }
 0x6fd   :  { %4702 = vrcp.f32 %v5907_v55 }
 0x6ff   :  { %v4699_v14 = vpop.eup %4698 }
 0x700   :  { %v5911_v18 = vpop.xlane.xlu1 %1317 }
 0x701   :  { %4704 = vrcp.f32 %v5911_v18 }
 0x703   :  { %v4701_v26 = vpop.eup %4700 }
 0x704   :  { %v5914_v21 = vpop.xlane.xlu1 %1272 }
 0x705   :  { %4706 = vrcp.f32 %v5914_v21 }
 0x707   :  { %v4703_v60 = vpop.eup %4702 }
 0x708   :  { %v5923_v28 = vpop.xlane.xlu1 %1320 }
 0x709   :  { %4708 = vrcp.f32 %v5923_v28  ;;  %v3551_v28 = vsel %vm1853_vm5, %v3550_v23, %v3546_v59  ;;  %v1939_v59 = vrot.slane %v4699_v14, %v5856_v53  ;;  %v1978_v14 = vrot.slane %v4701_v26, %v5856_v53 }
 0x70b   :  { %v4705_v30 = vpop.eup %4704 }
 0x70c   :  { %v1276_v11 = vpop.xlane.xlu1 %1275 }
 0x70d   :  { %4710 = vrcp.f32 %v1276_v11  ;;  %v3556_v11 = vsel %vm1860_vm6, %v3555_v56, %v3551_v28 }
 0x70e   :  { %v3561_v2 = vsel %vm1867_vm7, %v3560_v29, %v3556_v11 }
 0x70f   :  { %v4707_v1 = vpop.eup %4706 }
 0x710   :  { %v1324_v42 = vpop.xlane.xlu1 %1323  ;;  %v1866_v9 = vrot.slane %v4707_v1, %v5936_v22 }
 0x711   :  { %4712 = vrcp.f32 %v1324_v42 }
 0x713   :  { %v4709_v38 = vpop.eup %4708 }
 0x714   :  { %v1279_v27 = vpop.xlane.xlu1 %1278  ;;  %v1953_v23 = vrot.slane %v4709_v38, %v5936_v22 }
 0x715   :  { %v5964_v63 = vpop.xlane.xlu0 %3011 }
 0x717   :  { %v4711_v12 = vpop.eup %4710 }
 0x718   :  { %v1327_v4 = vpop.xlane.xlu1 %1326 }
 0x719   :  { %v5973_v20 = vpop.xlane.xlu0 %1290 }
 0x71a   :  { %v3110_v24 = vpop.f32.mrb[44].mxu1 }
 0x71b   :  { %v3688_v55 = vmul.f32 %v3542_v41, %v3110_v24  ;;  %v4306_v52 = vpop.f32.mrb[45].mxu1  ;;  %v4713_v49 = vpop.eup %4712  ;;  %v3580_v41 = vrot.slane %v4695_v3, %v5960_v25 }
 0x71c   :  { %v1282_v18 = vpop.xlane.xlu1 %1281 }
 0x71d   :  { %3696 = vrot.lane.b32.xlu1 %v3688_v55, %s4819_s29  ;;  %v1315_v21 = vpop.xlane.xlu0 %1314  ;;  %v1859_v55 = vrot.slane %v4703_v60, %v5919_v45 }
 0x71e   :  { %4714 = vrcp.f32 %v1315_v21  ;;  %v1873_v21 = vrot.slane %v4711_v12, %v5929_v58 }
 0x71f   :  { %4716 = vrcp.f32 %v1279_v27  ;;  %v3566_v27 = vsel %vm1874_vm8, %v3565_v48, %v3561_v2  ;;  %v1958_v48 = vrot.slane %v4713_v49, %v5929_v58 }
 0x720   :  { %4718 = vrcp.f32 %v1282_v18  ;;  %v1330_v17 = vpop.xlane.xlu1 %1329  ;;  %v3571_v46 = vsel %vm1881_vm9, %v3570_v0, %v3566_v27  ;;  %v1948_v18 = vrot.slane %v4705_v30, %v5919_v45 }
 0x721   :  { %v1339_v42 = vpop.xlane.xlu0 %1338  ;;  %v3576_v24 = vsel %vm1888_vm10, %v3575_v6, %v3571_v46 }
 0x722   :  { %4720 = vrcp.f32 %v1339_v42  ;;  %v3581_v32 = vsel %vm1895_vm11, %v3580_v41, %v3576_v24  ;;  %v1861_v42 = vsel %vm1860_vm6, %v1859_v55, %v5863_v54 }
 0x723   :  { %4722 = vrcp.f32 %v1327_v4  ;;  %v1868_v26 = vsel %vm1867_vm7, %v1866_v9, %v1861_v42 }
 0x724   :  { %v1285_v47 = vpop.xlane.xlu1 %1284  ;;  %v1875_v54 = vsel %vm1874_vm8, %v1873_v21, %v1868_v26 }
 0x725   :  { %4724 = vrcp.f32 %v1285_v47  ;;  %v5989_v36 = vpop.xlane.xlu0 %1293 }
 0x726   :  { %4726 = vrcp.f32 %v1330_v17 }
 0x728   :  { %v4715_v4 = vpop.eup %4714  ;;  %v1333_v19 = vpop.xlane.xlu1 %1332 }
 0x729   :  { %v4717_v57 = vpop.eup %4716  ;;  %v1943_v52 = vrot.slane %v4715_v4, %v5852_v62  ;;  %4728 = vrcp.f32 %v1333_v19  ;;  %v1342_v7 = vpop.xlane.xlu0 %1341 }
 0x72a   :  { %v4719_v56 = vpop.eup %4718  ;;  %4730 = vrcp.f32 %v1342_v7  ;;  %v1880_v17 = vrot.slane %v4717_v57, %v5939_v51  ;;  %v6210_v7 = vld [vmem:[#allocation20_spill] sm:$0xff] }
 0x72b   :  { %v1944_v3 = vsel %vm1853_vm5, %v1943_v52, %v1939_v59  ;;  %v1887_v60 = vrot.slane %v4719_v56, %v5944_v50  ;;  %4732 = vrcp.f32 %v5875_v40 }
 0x72c   :  { %v4721_v28 = vpop.eup %4720  ;;  %v1949_v11 = vsel %vm1860_vm6, %v1948_v18, %v1944_v3  ;;  %v1882_v19 = vsel %vm1881_vm9, %v1880_v17, %v1875_v54 }
 0x72d   :  { %v4723_v29 = vpop.eup %4722  ;;  %v1982_v30 = vrot.slane %v4721_v28, %v5852_v62  ;;  %v3208_v2 = vpop.f32.mrb[44].mxu0  ;;  %v1954_v47 = vsel %vm1867_vm7, %v1953_v23, %v1949_v11  ;;  %v1889_v41 = vsel %vm1888_vm10, %v1887_v60, %v1882_v19 }
 0x72e   :  { %v6012_v1 = vpop.xlane.xlu0 %1296  ;;  %v3689_v27 = vmul.f32 %v3581_v32, %v3208_v2  ;;  %v4325_v6 = vpop.f32.mrb[45].mxu0  ;;  %v1959_v38 = vsel %vm1874_vm8, %v1958_v48, %v1954_v47  ;;  %v1963_v46 = vrot.slane %v4723_v29, %v5939_v51  ;;  %v6211_v32 = vld [vmem:[#allocation21_spill] sm:$0xff] }
 0x72f   :  { %v4725_v0 = vpop.eup %4724  ;;  %v1983_v12 = vsel %vm1853_vm5, %v1982_v30, %v1978_v14 }
 0x730   :  { %v4727_v49 = vpop.eup %4726  ;;  %v1894_v4 = vrot.slane %v4725_v0, %v5960_v25  ;;  %3698 = vrot.lane.b32.xlu0 %v3689_v27, %s4819_s29  ;;  %v1964_v59 = vsel %vm1881_vm9, %v1963_v46, %v1959_v38 }
 0x731   :  { %v1968_v52 = vrot.slane %v4727_v49, %v5944_v50 }
 0x732   :  { %v1345_v24 = vpop.xlane.xlu0 %1344  ;;  %v1896_v57 = vsel %vm1895_vm11, %v1894_v4, %v1889_v41 }
 0x733   :  { %4734 = vrcp.f32 %v1345_v24  ;;  %v4729_v55 = vpop.eup %4728  ;;  %v6030_v56 = vmul.f32 %v1896_v57, %v6210_v7  ;;  %v1969_v21 = vsel %vm1888_vm10, %v1968_v52, %v1964_v59 }
 0x734   :  { %4736 = vrcp.f32 %v5881_v15  ;;  %v4731_v18 = vpop.eup %4730  ;;  %v1973_v40 = vrot.slane %v4729_v55, %v5960_v25 }
 0x735   :  { %4738 = vrcp.f32 %v5867_v33  ;;  %v1987_v9 = vrot.slane %v4731_v18, %v5919_v45  ;;  %v4733_v33 = vpop.eup %4732 }
 0x736   :  { %v1300_v23 = vpop.xlane.xlu0 %1299  ;;  %v1974_v3 = vsel %vm1895_vm11, %v1973_v40, %v1969_v21  ;;  %4740 = vrcp.f32 %v5887_v8  ;;  %v3585_v42 = vrot.slane %v4733_v33, %v5856_v53 }
 0x737   :  { %v1988_v15 = vsel %vm1860_vm6, %v1987_v9, %v1983_v12  ;;  %v6040_v28 = vmul.f32 %v1974_v3, %v6211_v32  ;;  %4742 = vrcp.f32 %v5877_v35 }
 0x73a   :  { %v1348_v14 = vpop.xlane.xlu0 %1347 }
 0x73b   :  { %4744 = vrcp.f32 %v1348_v14 }
 0x73c   :  { %4746 = vrcp.f32 %v5893_v5 }
 0x73d   :  { %v4735_v48 = vpop.eup %4734  ;;  %4748 = vrcp.f32 %v5883_v34 }
 0x73e   :  { %v4737_v17 = vpop.eup %4736  ;;  %v1992_v11 = vrot.slane %v4735_v48, %v5936_v22  ;;  %v1303_v29 = vpop.xlane.xlu0 %1302  ;;  %4750 = vrcp.f32 %v5847_v61 }
 0x73f   :  { %v4739_v8 = vpop.eup %4738  ;;  %4752 = vrcp.f32 %v5899_v39  ;;  %v3594_v60 = vrot.slane %v4737_v17, %v5919_v45 }
 0x740   :  { %v1993_v35 = vsel %vm1867_vm7, %v1992_v11, %v1988_v15  ;;  %4754 = vrcp.f32 %v5891_v10  ;;  %v4741_v5 = vpop.eup %4740  ;;  %v3589_v34 = vrot.slane %v4739_v8, %v5852_v62 }
 0x741   :  { %4756 = vrcp.f32 %v5909_v44  ;;  %v4743_v2 = vpop.eup %4742  ;;  %v3604_v39 = vrot.slane %v4741_v5, %v5929_v58 }
 0x742   :  { %v1351_v30 = vpop.xlane.xlu0 %1350  ;;  %v3590_v61 = vsel %vm1853_vm5, %v3589_v34, %v3585_v42  ;;  %v3599_v27 = vrot.slane %v4743_v2, %v5936_v22 }
 0x743   :  { %4758 = vrcp.f32 %v1351_v30  ;;  %v3595_v26 = vsel %vm1860_vm6, %v3594_v60, %v3590_v61 }
 0x744   :  { %4760 = vrcp.f32 %v5897_v43  ;;  %v3600_v43 = vsel %vm1867_vm7, %v3599_v27, %v3595_v26 }
 0x745   :  { %v4745_v47 = vpop.eup %4744  ;;  %4762 = vrcp.f32 %v5973_v20  ;;  %v3605_v20 = vsel %vm1874_vm8, %v3604_v39, %v3600_v43 }
 0x746   :  { %v4747_v10 = vpop.eup %4746  ;;  %4764 = vrcp.f32 %v5989_v36  ;;  %v1997_v44 = vrot.slane %v4745_v47, %v5929_v58  ;;  %v1306_v6 = vpop.xlane.xlu0 %1305 }
 0x747   :  { %v4749_v38 = vpop.eup %4748  ;;  %4766 = vrcp.f32 %v6012_v1  ;;  %v3614_v54 = vrot.slane %v4747_v10, %v5944_v50 }
 0x748   :  { %4768 = vrcp.f32 %v1300_v23  ;;  %v1998_v0 = vsel %vm1874_vm8, %v1997_v44, %v1993_v35  ;;  %v4751_v12 = vpop.eup %4750  ;;  %v3609_v46 = vrot.slane %v4749_v38, %v5939_v51 }
 0x749   :  { %4770 = vrcp.f32 %v1303_v29  ;;  %v4753_v49 = vpop.eup %4752  ;;  %v1900_v17 = vrot.slane %v4751_v12, %v5856_v53 }
 0x74a   :  { %4772 = vrcp.f32 %v1306_v6  ;;  %v1354_v36 = vpop.xlane.xlu0 %1353  ;;  %v4755_v4 = vpop.eup %4754  ;;  %v3610_v1 = vsel %vm1881_vm9, %v3609_v46, %v3605_v20  ;;  %v3628_v11 = vrot.slane %v4753_v49, %v5852_v62 }
 0x74b   :  { %v4757_v19 = vpop.eup %4756  ;;  %4774 = vrcp.f32 %v5931_v37  ;;  %v3615_v41 = vsel %vm1888_vm10, %v3614_v54, %v3610_v1  ;;  %v3619_v52 = vrot.slane %v4755_v4, %v5960_v25  ;;  %v6212_v54 = vld [vmem:[#allocation22_spill] sm:$0xff] }
 0x74c   :  { %4776 = vrcp.f32 %v5905_v31  ;;  %v3633_v34 = vrot.slane %v4757_v19, %v5919_v45 }
 0x74d   :  { %v4759_v24 = vpop.eup %4758  ;;  %4778 = vrcp.f32 %v1354_v36  ;;  %v3620_v40 = vsel %vm1895_vm11, %v3619_v52, %v3615_v41  ;;  %v6213_v41 = vld [vmem:[#allocation23_spill] sm:$0xff] }
 0x74e   :  { %v4761_v57 = vpop.eup %4760  ;;  %v2002_v59 = vrot.slane %v4759_v24, %v5939_v51  ;;  %v1309_v55 = vpop.xlane.xlu0 %1308 }
 0x74f   :  { %v4763_v7 = vpop.eup %4762  ;;  %4780 = vrcp.f32 %v1309_v55  ;;  %v3306_v37 = vpop.f32.mrb[46].mxu1  ;;  %v3624_v15 = vrot.slane %v4761_v57, %v5856_v53 }
 0x750   :  { %v4765_v18 = vpop.eup %4764  ;;  %4782 = vrcp.f32 %v5964_v63  ;;  %v2003_v9 = vsel %vm1881_vm9, %v2002_v59, %v1998_v0  ;;  %v3690_v23 = vmul.f32 %v3620_v40, %v3306_v37  ;;  %v4344_v21 = vpop.f32.mrb[47].mxu1  ;;  %v1904_v32 = vrot.slane %v4763_v7, %v5852_v62  ;;  %v4790_v37 = vld [vmem:[%s6147_s0] sm:$0xff] }
 0x751   :  { %v4767_v31 = vpop.eup %4766  ;;  %4784 = vrcp.f32 %v5916_v16  ;;  %v1909_v48 = vrot.slane %v4765_v18, %v5919_v45  ;;  %v3629_v60 = vsel %vm1853_vm5, %v3628_v11, %v3624_v15 }
 0x752   :  { %v4769_v3 = vpop.eup %4768  ;;  %v1357_v14 = vpop.xlane.xlu0 %1356  ;;  %3700 = vrot.lane.b32.xlu1 %v3690_v23, %s4819_s29  ;;  %v1914_v16 = vrot.slane %v4767_v31, %v5936_v22  ;;  %v1905_v42 = vsel %vm1853_vm5, %v1904_v32, %v1900_v17  ;;  %v3634_v47 = vsel %vm1860_vm6, %v3633_v34, %v3629_v60  ;;  %v4791_v31 = vld [vmem:[%s6147_s0 + $0x8] sm:$0xff] }
 0x753   :  { %v4771_v33 = vpop.eup %4770  ;;  %4786 = vrcp.f32 %v1357_v14  ;;  %v1919_v29 = vrot.slane %v4769_v3, %v5929_v58  ;;  %v1910_v53 = vsel %vm1860_vm6, %v1909_v48, %v1905_v42 }
 0x754   :  { %v4773_v63 = vpop.eup %4772  ;;  %4788 = vrcp.f32 %v5951_v13  ;;  %v1924_v35 = vrot.slane %v4771_v33, %v5939_v51  ;;  %v1915_v2 = vsel %vm1867_vm7, %v1914_v16, %v1910_v53  ;;  %v4793_v33 = vld [vmem:[%s6147_s0 + $0x18] sm:$0xff] }
 0x755   :  { %v4775_v8 = vpop.eup %4774  ;;  %v1929_v62 = vrot.slane %v4773_v63, %v5944_v50  ;;  %v1920_v39 = vsel %vm1874_vm8, %v1919_v29, %v1915_v2 }
 0x756   :  { %v4777_v5 = vpop.eup %4776  ;;  %v3643_v61 = vrot.slane %v4775_v8, %v5929_v58  ;;  %v1925_v45 = vsel %vm1881_vm9, %v1924_v35, %v1920_v39 }
 0x757   :  { %v4779_v30 = vpop.eup %4778  ;;  %v3638_v10 = vrot.slane %v4777_v5, %v5936_v22  ;;  %v1930_v38 = vsel %vm1888_vm10, %v1929_v62, %v1925_v45 }
 0x758   :  { %v2007_v6 = vrot.slane %v4779_v30, %v5944_v50 }
 0x759   :  { %v4781_v13 = vpop.eup %4780  ;;  %v3639_v43 = vsel %vm1867_vm7, %v3638_v10, %v3634_v47 }
 0x75a   :  { %v4783_v26 = vpop.eup %4782  ;;  %v1934_v27 = vrot.slane %v4781_v13, %v5960_v25  ;;  %v3644_v12 = vsel %vm1874_vm8, %v3643_v61, %v3639_v43  ;;  %v2008_v4 = vsel %vm1888_vm10, %v2007_v6, %v2003_v9 }
 0x75b   :  { %v4785_v44 = vpop.eup %4784  ;;  %v3653_v20 = vrot.slane %v4783_v26, %v5944_v50 }
 0x75c   :  { %v1935_v58 = vsel %vm1895_vm11, %v1934_v27, %v1930_v38  ;;  %v3648_v36 = vrot.slane %v4785_v44, %v5939_v51 }
 0x75d   :  { %v4787_v0 = vpop.eup %4786  ;;  %v2049_v22 = vmul.f32 %v1935_v58, %v6212_v54 }
 0x75e   :  { %v2012_v49 = vrot.slane %v4787_v0, %v5960_v25  ;;  %v4789_v46 = vpop.eup %4788  ;;  %v3649_v19 = vsel %vm1881_vm9, %v3648_v36, %v3644_v12 }
 0x75f   :  { %v3654_v24 = vsel %vm1888_vm10, %v3653_v20, %v3649_v19  ;;  %v3658_v59 = vrot.slane %v4789_v46, %v5960_v25 }
 0x760   :  { %v2013_v1 = vsel %vm1895_vm11, %v2012_v49, %v2008_v4 }
 0x761   :  { %v2051_v57 = vmul.f32 %v2013_v1, %v6213_v41  ;;  %v3659_v55 = vsel %vm1895_vm11, %v3658_v59, %v3654_v24 }
 0x763   :  { %v3404_v50 = vpop.f32.mrb[46].mxu0 }
 0x764   :  { %v3691_v52 = vmul.f32 %v3659_v55, %v3404_v50  ;;  %v4363_v7 = vpop.f32.mrb[47].mxu0 }
 0x766   :  { %3702 = vrot.lane.b32.xlu1 %v3691_v52, %s4819_s29 }
 0x78f   :  { %v3697_v51 = vpop.permute.xlu1 %3696 }
 0x790   :  { %v3708_v18 = vsel %vm1069_vm2, %v6030_v56, %v3697_v51  ;;  %v4792_v56 = vld [vmem:[%s6147_s0 + $0x10] sm:$0xff] }
 0x791   :  { %v3712_v40 = vadd.f32 %v4790_v37, %v3708_v18 }
 0x793   :  { %3716 = vst [vmem:[#allocation2] sm:$0xff] %v3712_v40 }
 0x7a2   :  { %v3699_v9 = vpop.permute.xlu0 %3698 }
 0x7a3   :  { %v3709_v25 = vsel %vm1069_vm2, %v2049_v22, %v3699_v9 }
 0x7a4   :  { %v3713_v23 = vadd.f32 %v4791_v31, %v3709_v25 }
 0x7a6   :  { %3717 = vst [vmem:[#allocation2 + $0x8] sm:$0xff] %v3713_v23 }
 0x7c4   :  { %v3701_v21 = vpop.permute.xlu1 %3700 }
 0x7c5   :  { %v3710_v3 = vsel %vm1069_vm2, %v6040_v28, %v3701_v21 }
 0x7c6   :  { %v3714_v15 = vadd.f32 %v4792_v56, %v3710_v3 }
 0x7c8   :  { %3718 = vst [vmem:[#allocation2 + $0x10] sm:$0xff] %v3714_v15 }
 0x7d8   :  { %v3703_v32 = vpop.permute.xlu1 %3702 }
 0x7d9   :  { %v3711_v14 = vsel %vm1069_vm2, %v2051_v57, %v3703_v32 }
 0x7da   :  { %v3715_v48 = vadd.f32 %v4793_v33, %v3711_v14 }
 0x7dc   :  { %3719 = vst [vmem:[#allocation2 + $0x18] sm:$0xff] %v3715_v48 }
 0x7dd   :  { %4805 = shalt.err (!%p4802_p4)
}
 0x7de   :  { %s4806_s22 = scalar_lea.hbm %s6152_s5, 512 }
 0x7df   :  { %p4807_p5 = scmp.ne.s32.totalorder %s6152_s5, %s4806_s22  ;;  %p4810_p6 = scmp.lt.u32.totalorder %s4806_s22, %s6152_s5 }
 0x7e1   :  { %p4812_p7 = pnand %p4810_p6, %p4807_p5 }
 0x7e3   :  { %4815 = shalt.err (!%p4812_p7)
}
 0x7e4   :  { %s4824_s26 = smov 128   ;;  %s4825_s27 = smov 8  }
 0x7e5   :  { %3731 = dma.vmem_to_hbm [thread:$0]  %s3726_s17, 512, %s6152_s5, [#allocation3], %s4824_s26, %s4824_s26, %s4825_s27  }
 0x7e6   :  { %4816 = dma.done.wait [#allocation3], 512  }
 0x7e7   :  { %4817 = vsyncadd [#allocation3], 4294966784 }
 0x7e8   :  { %3735 = vsyncpa [#allocation3], 1 }

</bundles_post_ra>
